<compile_context>
chip_gen: v5e
topology: v5e:2x2
jax: 0.10.0
libtpu: 0.0.40
codegen_flags: <defaults>
</compile_context>

<pallas_src>
import functools

import jax
import jax.numpy as jnp
from jax.experimental import pallas as pl
from jax.experimental.pallas import tpu as pltpu


def _mish(x):
    # F.mish(x) = x * tanh(softplus(x)); single-exp form:
    #   t = exp(x); u = t*(t+2); tanh(softplus(x)) = u/(u+2) -> mish = x*u/(u+2)
    t = jnp.exp(x)
    u = t * (t + 2.0)
    y = x * u * pl.reciprocal(u + 2.0, approx=True)
    return jnp.where(x > 20.0, x, y)   # overflow guard: mish(x) ~= x for large x


# ----------------------------------------------------------------------------
# Fused forward kernel: one grid step == BT batch elements, fully VMEM resident.
# ----------------------------------------------------------------------------
def _wno1d_fused_kernel(
    x_ref,        # (BT, L, 1)    a(x) columns (channels-last)
    w_a_ref,      # (1, C)        fused fc0->fc1 weights for the a(x) channel
    gbias_ref,    # (L, C)        constant grid-channel term + fused bias
    w_eff_ref,    # (BT, H, C, C) per-batch effective hidden weights
    w0_b_ref,     # (H, 1, C)     skip-conv biases
    fc2_w_ref,    # (C, 128)
    fc2_b_ref,    # (1, 128)
    fc3_wt_ref,   # (1, 128)      fc3 weight stored transposed (row)
    fc3_b_ref,    # (1,)          scalar bias in SMEM
    o_ref,        # (1, 1, BT*L)  lane-dense output row
    *, hidden_dim, bt, padding,
):
    L = x_ref.shape[1]

    cols = []
    for b in range(bt):
        # fc0 + fc1 fused: one broadcast FMA on the VPU.
        hb = x_ref[b] * w_a_ref[...] + gbias_ref[...]              # (L, C)

        if padding:
            # TODO(synk): prefer padding % 8 == 0 so pad/slice stays sublane aligned.
            hb = jnp.pad(hb, ((0, padding), (0, 0)))

        # Hidden wavelet-integral blocks: ONE MXU matmul each (gate + experts +
        # skip conv already folded into w_eff host-side), then mish.
        for hd in range(hidden_dim):
            hb = jnp.dot(hb, w_eff_ref[b, hd],
                         preferred_element_type=jnp.float32) + w0_b_ref[hd]
            hb = _mish(hb)

        if padding:
            hb = hb[:L, :]
        cols.append(hb)

    # (BT*L, C): sublane-aligned concat (L % 8 == 0) -> fat M for fc2/fc3.
    h = cols[0] if bt == 1 else jnp.concatenate(cols, axis=0)

    # fc2 + mish; the (BT*L, 128) intermediate never leaves VMEM.
    h = jnp.dot(h, fc2_w_ref[...], preferred_element_type=jnp.float32) + fc2_b_ref[...]
    h = _mish(h)

    # fc3: contract the 128 channels into a lane-dense (1, BT*L) row.
    out_row = jax.lax.dot_general(
        fc3_wt_ref[...], h,
        dimension_numbers=(((1,), (1,)), ((), ())),
        preferred_element_type=jnp.float32,
    )                                                              # (1, BT*L)
    o_ref[0] = (out_row + fc3_b_ref[0]).astype(o_ref.dtype)


# ----------------------------------------------------------------------------
# Wrapper
# ----------------------------------------------------------------------------
def _choose_bt(batch, max_bt=8):
    # Largest BT <= max_bt that divides batch while keeping >= 2 grid steps
    # (keeps both v7x TensorCores busy; on v5e/v6e it amortizes step overhead).
    if batch <= 1:
        return 1
    best = 1
    for bt in range(1, min(batch, max_bt) + 1):
        if batch % bt == 0 and batch // bt >= 2:
            best = bt
    return best


def wno1d_forward(params, x_bcl, label, *, space_len, padding=0, max_bt=8):
    """x_bcl: (B, input_dim-1, L) in PyTorch NCL layout.  Returns (B, 1, L)."""
    B, _, L = x_bcl.shape
    C = params["fc1"]["w"].shape[0]
    H = len(params["w_layers"])
    Lp = L + padding
    f32 = jnp.float32

    BT = _choose_bt(B, max_bt)
    G = B // BT

    # ---- fold fc0 -> fc1 (both linear, no activation between) ----------------
    w01 = params["fc0"]["w"] @ params["fc1"]["w"]                          # (2, C)
    b01 = params["fc0"]["b"] @ params["fc1"]["w"] + params["fc1"]["b"]     # (1, C)
    grid_x = jnp.linspace(0.0, float(space_len), L, dtype=f32)             # (L,)
    w_a = w01[0:1, :]                                                      # (1, C)
    grid_bias = grid_x[:, None] * w01[1:2, :] + b01                        # (L, C)

    # ---- gate + effective hidden weights hoisted host-side -------------------
    # TODO(synk): Gate_context1d not provided; synthetic gate = softmax over
    # experts of (per-channel spatial mean of lifted x)*wx + label@wl + b.
    # fc0/fc1 are linear and pad rows are zero, so the mean (over padded Lp)
    # commutes and is computed from the raw input.
    a_sum = jnp.sum(x_bcl[:, 0, :].astype(f32), axis=-1)                   # (B,)
    mean_row = (a_sum[:, None] * w_a +
                jnp.sum(grid_bias, axis=0, keepdims=True)) / float(Lp)     # (B, C)

    wx = jnp.stack([g["wx"] for g in params["gates"]], axis=0)             # (H, E)
    wl = jnp.stack([g["wl"] for g in params["gates"]], axis=0)             # (H, LL, E)
    gb = jnp.stack([g["b"] for g in params["gates"]], axis=0)              # (H, E)
    lab_term = jnp.einsum("l,hle->he", label.astype(f32), wl) + gb         # (H, E)

    logits = (mean_row[:, None, None, :] * wx[None, :, :, None]
              + lab_term[None, :, :, None])                                # (B, H, E, C)
    lam = jax.nn.softmax(logits, axis=2)                                   # over experts

    # TODO(synk): WaveConv1d (DWT/IDWT) unavailable; experts are per-expert
    # channel-mixing matrices.  W_eff[b,h,i,c] = W0[h,i,c] + sum_e lam*We.
    expert_w = jnp.stack(params["experts"], axis=0)                        # (H, E, C, C)
    w0_w = jnp.stack([w["w"] for w in params["w_layers"]], axis=0)         # (H, C, C)
    w0_b = jnp.stack([w["b"] for w in params["w_layers"]], axis=0)         # (H, 1, C)
    w_eff = w0_w[None] + jnp.einsum("bhec,heic->bhic", lam, expert_w)      # (B, H, C, C)

    fc3_wt = params["fc3"]["w"].T                                          # (1, 128)
    fc3_b = params["fc3"]["b"].reshape((1,))                               # (1,) SMEM

    x_in = jnp.transpose(x_bcl, (0, 2, 1))                                 # (B, L, 1), free

    kern = functools.partial(_wno1d_fused_kernel,
                             hidden_dim=H, bt=BT, padding=int(padding))

    out = pl.pallas_call(
        kern,
        out_shape=jax.ShapeDtypeStruct((G, 1, BT * L), x_bcl.dtype),
        grid_spec=pltpu.PrefetchScalarGridSpec(
            num_scalar_prefetch=0,
            grid=(G,),
            in_specs=[
                pl.BlockSpec((BT, L, 1), lambda g: (g, 0, 0)),             # x
                pl.BlockSpec((1, C), lambda g: (0, 0)),                    # fused a-row
                pl.BlockSpec((L, C), lambda g: (0, 0)),                    # grid bias
                pl.BlockSpec((BT, H, C, C), lambda g: (g, 0, 0, 0)),       # per-batch W_eff
                pl.BlockSpec((H, 1, C), lambda g: (0, 0, 0)),              # skip biases
                pl.BlockSpec((C, 128), lambda g: (0, 0)),                  # fc2 w
                pl.BlockSpec((1, 128), lambda g: (0, 0)),                  # fc2 b
                pl.BlockSpec((1, 128), lambda g: (0, 0)),                  # fc3 w row
                pl.BlockSpec(memory_space=pltpu.MemorySpace.SMEM),         # fc3 b scalar
            ],
            out_specs=pl.BlockSpec((1, 1, BT * L), lambda g: (g, 0, 0)),
        ),
        compiler_params=pltpu.CompilerParams(
            dimension_semantics=("parallel",),   # >= 2 parallel steps -> both v7x TCs busy
        ),
    )(x_in, w_a, grid_bias, w_eff, w0_b,
      params["fc2"]["w"], params["fc2"]["b"], fc3_wt, fc3_b)

    # (G, 1, BT*L) and (B, 1, L) share the same row-major layout -> free reshape.
    return out.reshape(B, 1, L)


# ----------------------------------------------------------------------------
# Parameter construction (deterministic, Conv1d-style init)
# ----------------------------------------------------------------------------
def init_params(key, *, width, input_dim, hidden_dim, expert_num, label_lifting):
    def conv_params(k, cin, cout):
        kw, kb = jax.random.split(k)
        bound = 1.0 / jnp.sqrt(cin)
        w = jax.random.uniform(kw, (cin, cout), jnp.float32, -bound, bound)
        b = jax.random.uniform(kb, (1, cout), jnp.float32, -bound, bound)
        return {"w": w, "b": b}

    keys = jax.random.split(key, 6 + 3 * hidden_dim)
    p = {}
    p["fc0"] = conv_params(keys[0], input_dim, width)
    p["fc1"] = conv_params(keys[1], width, width)
    p["fc2"] = conv_params(keys[2], width, 128)
    p["fc3"] = conv_params(keys[3], 128, 1)

    p["w_layers"] = []
    p["experts"] = []
    p["gates"] = []
    for h in range(hidden_dim):
        kw, ke, kg = keys[4 + 3 * h], keys[5 + 3 * h], keys[6 + 3 * h]
        p["w_layers"].append(conv_params(kw, width, width))
        scale = 1.0 / (width * width)
        p["experts"].append(
            scale * jax.random.normal(ke, (expert_num, width, width), jnp.float32)
        )
        kg1, kg2, kg3 = jax.random.split(kg, 3)
        p["gates"].append({
            "wx": 0.1 * jax.random.normal(kg1, (expert_num,), jnp.float32),
            "wl": 0.1 * jax.random.normal(kg2, (label_lifting, expert_num), jnp.float32),
            "b": 0.1 * jax.random.normal(kg3, (expert_num,), jnp.float32),
        })
    return p


# ----------------------------------------------------------------------------
if __name__ == "__main__":
    batch = 8
    size = 64           # spatial length
    width = 32          # lifting dimension
    input_dim = 2       # (a(x), grid)
    hidden_dim = 2      # number of wavelet integral blocks
    expert_num = 10     # db1..db10 experts
    label_lifting = 8
    space_len = 1.0

    key = jax.random.PRNGKey(0)
    kp, kx, kl = jax.random.split(key, 3)

    params = init_params(
        kp, width=width, input_dim=input_dim, hidden_dim=hidden_dim,
        expert_num=expert_num, label_lifting=label_lifting,
    )

    x = jax.random.normal(kx, (batch, input_dim - 1, size), jnp.float32)   # (B, 1, L)
    label = jax.random.normal(kl, (label_lifting,), jnp.float32)

    fwd = jax.jit(functools.partial(wno1d_forward, space_len=space_len, padding=0))
    out = jax.block_until_ready(fwd(params, x, label))

    assert out.shape == (batch, 1, size), out.shape
    assert out.dtype == jnp.float32
    assert bool(jnp.all(jnp.isfinite(out)))
    print("KERNEL_OK")
</pallas_src>

<mosaic_0001>
module attributes {stable_mosaic.version = 11 : i64} {
  func.func @_wno1d_fused_kernel(%arg0: i32, %arg1: memref<4x64x1xf32, #tpu.memory_space<vmem>>, %arg2: memref<1x32xf32, #tpu.memory_space<vmem>>, %arg3: memref<64x32xf32, #tpu.memory_space<vmem>>, %arg4: memref<4x2x32x32xf32, #tpu.memory_space<vmem>>, %arg5: memref<2x1x32xf32, #tpu.memory_space<vmem>>, %arg6: memref<32x128xf32, #tpu.memory_space<vmem>>, %arg7: memref<1x128xf32, #tpu.memory_space<vmem>>, %arg8: memref<1x128xf32, #tpu.memory_space<vmem>>, %arg9: memref<1xf32, #tpu.memory_space<smem>>, %arg10: memref<1x1x256xf32, #tpu.memory_space<vmem>>) attributes {dimension_semantics = [#tpu.dimension_semantics<parallel>], iteration_bounds = array<i64: 2>, scalar_prefetch = 0 : i64, scratch_operands = 0 : i64, tpu.core_type = #tpu.core_type<tc>, window_params = [{transform_indices = @transform_0, window_bounds = array<i64: 4, 64, 1>}, {pipeline_mode = #tpu.pipeline_mode<synchronous>, transform_indices = @transform_1, window_bounds = array<i64: 1, 32>}, {pipeline_mode = #tpu.pipeline_mode<synchronous>, transform_indices = @transform_2, window_bounds = array<i64: 64, 32>}, {transform_indices = @transform_3, window_bounds = array<i64: 4, 2, 32, 32>}, {pipeline_mode = #tpu.pipeline_mode<synchronous>, transform_indices = @transform_4, window_bounds = array<i64: 2, 1, 32>}, {pipeline_mode = #tpu.pipeline_mode<synchronous>, transform_indices = @transform_5, window_bounds = array<i64: 32, 128>}, {pipeline_mode = #tpu.pipeline_mode<synchronous>, transform_indices = @transform_6, window_bounds = array<i64: 1, 128>}, {pipeline_mode = #tpu.pipeline_mode<synchronous>, transform_indices = @transform_7, window_bounds = array<i64: 1, 128>}, {transform_indices = @transform_8, window_bounds = array<i64: 1>}, {transform_indices = @transform_9, window_bounds = array<i64: 1, 1, 256>}]} {
    %c0 = arith.constant 0 : index
    %c0_0 = arith.constant 0 : index
    %c0_1 = arith.constant 0 : index
    %0 = vector.load %arg1[%c0, %c0_0, %c0_1] : memref<4x64x1xf32, #tpu.memory_space<vmem>>, vector<1x64x1xf32>
    %1 = vector.shape_cast %0 : vector<1x64x1xf32> to vector<64x1xf32>
    %c0_2 = arith.constant 0 : index
    %c0_3 = arith.constant 0 : index
    %2 = vector.load %arg2[%c0_2, %c0_3] : memref<1x32xf32, #tpu.memory_space<vmem>>, vector<1x32xf32>
    %3 = vector.broadcast %1 : vector<64x1xf32> to vector<64x32xf32>
    %4 = vector.broadcast %2 : vector<1x32xf32> to vector<64x32xf32>
    %5 = arith.mulf %3, %4 : vector<64x32xf32>
    %c0_4 = arith.constant 0 : index
    %c0_5 = arith.constant 0 : index
    %6 = vector.load %arg3[%c0_4, %c0_5] : memref<64x32xf32, #tpu.memory_space<vmem>>, vector<64x32xf32>
    %7 = arith.addf %5, %6 : vector<64x32xf32>
    %c0_6 = arith.constant 0 : index
    %c0_7 = arith.constant 0 : index
    %c0_8 = arith.constant 0 : index
    %c0_9 = arith.constant 0 : index
    %8 = vector.load %arg4[%c0_6, %c0_7, %c0_8, %c0_9] : memref<4x2x32x32xf32, #tpu.memory_space<vmem>>, vector<1x1x32x32xf32>
    %9 = vector.shape_cast %8 : vector<1x1x32x32xf32> to vector<32x32xf32>
    %cst = arith.constant dense<0.000000e+00> : vector<64x32xf32>
    %10 = tpu.matmul %7, %9, %cst {dimension_numbers = #tpu.dot_dimension_numbers<[1], [0], [0], [1], [0, 0, 1, 1], [], []>} : vector<64x32xf32>, vector<32x32xf32>, vector<64x32xf32> -> vector<64x32xf32>
    %c0_10 = arith.constant 0 : index
    %c0_11 = arith.constant 0 : index
    %c0_12 = arith.constant 0 : index
    %11 = vector.load %arg5[%c0_10, %c0_11, %c0_12] : memref<2x1x32xf32, #tpu.memory_space<vmem>>, vector<1x1x32xf32>
    %12 = vector.shape_cast %11 : vector<1x1x32xf32> to vector<1x32xf32>
    %13 = vector.broadcast %12 : vector<1x32xf32> to vector<64x32xf32>
    %14 = arith.addf %10, %13 : vector<64x32xf32>
    %15 = math.exp %14 : vector<64x32xf32>
    %cst_13 = arith.constant 2.000000e+00 : f32
    %16 = vector.broadcast %cst_13 : f32 to vector<64x32xf32>
    %17 = arith.addf %15, %16 : vector<64x32xf32>
    %18 = arith.mulf %15, %17 : vector<64x32xf32>
    %19 = arith.mulf %14, %18 : vector<64x32xf32>
    %cst_14 = arith.constant 2.000000e+00 : f32
    %20 = vector.broadcast %cst_14 : f32 to vector<64x32xf32>
    %21 = arith.addf %18, %20 : vector<64x32xf32>
    %22 = tpu.reciprocal %21 {approx = true} : vector<64x32xf32> -> vector<64x32xf32>
    %23 = arith.mulf %19, %22 : vector<64x32xf32>
    %cst_15 = arith.constant 2.000000e+01 : f32
    %24 = vector.broadcast %cst_15 : f32 to vector<64x32xf32>
    %25 = arith.cmpf ogt, %14, %24 : vector<64x32xf32>
    %26 = arith.select %25, %14, %23 : vector<64x32xi1>, vector<64x32xf32>
    %c0_16 = arith.constant 0 : index
    %c1 = arith.constant 1 : index
    %c0_17 = arith.constant 0 : index
    %c0_18 = arith.constant 0 : index
    %27 = vector.load %arg4[%c0_16, %c1, %c0_17, %c0_18] : memref<4x2x32x32xf32, #tpu.memory_space<vmem>>, vector<1x1x32x32xf32>
    %28 = vector.shape_cast %27 : vector<1x1x32x32xf32> to vector<32x32xf32>
    %cst_19 = arith.constant dense<0.000000e+00> : vector<64x32xf32>
    %29 = tpu.matmul %26, %28, %cst_19 {dimension_numbers = #tpu.dot_dimension_numbers<[1], [0], [0], [1], [0, 0, 1, 1], [], []>} : vector<64x32xf32>, vector<32x32xf32>, vector<64x32xf32> -> vector<64x32xf32>
    %c1_20 = arith.constant 1 : index
    %c0_21 = arith.constant 0 : index
    %c0_22 = arith.constant 0 : index
    %30 = vector.load %arg5[%c1_20, %c0_21, %c0_22] : memref<2x1x32xf32, #tpu.memory_space<vmem>>, vector<1x1x32xf32>
    %31 = vector.shape_cast %30 : vector<1x1x32xf32> to vector<1x32xf32>
    %32 = vector.broadcast %31 : vector<1x32xf32> to vector<64x32xf32>
    %33 = arith.addf %29, %32 : vector<64x32xf32>
    %34 = math.exp %33 : vector<64x32xf32>
    %cst_23 = arith.constant 2.000000e+00 : f32
    %35 = vector.broadcast %cst_23 : f32 to vector<64x32xf32>
    %36 = arith.addf %34, %35 : vector<64x32xf32>
    %37 = arith.mulf %34, %36 : vector<64x32xf32>
    %38 = arith.mulf %33, %37 : vector<64x32xf32>
    %cst_24 = arith.constant 2.000000e+00 : f32
    %39 = vector.broadcast %cst_24 : f32 to vector<64x32xf32>
    %40 = arith.addf %37, %39 : vector<64x32xf32>
    %41 = tpu.reciprocal %40 {approx = true} : vector<64x32xf32> -> vector<64x32xf32>
    %42 = arith.mulf %38, %41 : vector<64x32xf32>
    %cst_25 = arith.constant 2.000000e+01 : f32
    %43 = vector.broadcast %cst_25 : f32 to vector<64x32xf32>
    %44 = arith.cmpf ogt, %33, %43 : vector<64x32xf32>
    %45 = arith.select %44, %33, %42 : vector<64x32xi1>, vector<64x32xf32>
    %c1_26 = arith.constant 1 : index
    %c0_27 = arith.constant 0 : index
    %c0_28 = arith.constant 0 : index
    %46 = vector.load %arg1[%c1_26, %c0_27, %c0_28] : memref<4x64x1xf32, #tpu.memory_space<vmem>>, vector<1x64x1xf32>
    %47 = vector.shape_cast %46 : vector<1x64x1xf32> to vector<64x1xf32>
    %c0_29 = arith.constant 0 : index
    %c0_30 = arith.constant 0 : index
    %48 = vector.load %arg2[%c0_29, %c0_30] : memref<1x32xf32, #tpu.memory_space<vmem>>, vector<1x32xf32>
    %49 = vector.broadcast %47 : vector<64x1xf32> to vector<64x32xf32>
    %50 = vector.broadcast %48 : vector<1x32xf32> to vector<64x32xf32>
    %51 = arith.mulf %49, %50 : vector<64x32xf32>
    %c0_31 = arith.constant 0 : index
    %c0_32 = arith.constant 0 : index
    %52 = vector.load %arg3[%c0_31, %c0_32] : memref<64x32xf32, #tpu.memory_space<vmem>>, vector<64x32xf32>
    %53 = arith.addf %51, %52 : vector<64x32xf32>
    %c1_33 = arith.constant 1 : index
    %c0_34 = arith.constant 0 : index
    %c0_35 = arith.constant 0 : index
    %c0_36 = arith.constant 0 : index
    %54 = vector.load %arg4[%c1_33, %c0_34, %c0_35, %c0_36] : memref<4x2x32x32xf32, #tpu.memory_space<vmem>>, vector<1x1x32x32xf32>
    %55 = vector.shape_cast %54 : vector<1x1x32x32xf32> to vector<32x32xf32>
    %cst_37 = arith.constant dense<0.000000e+00> : vector<64x32xf32>
    %56 = tpu.matmul %53, %55, %cst_37 {dimension_numbers = #tpu.dot_dimension_numbers<[1], [0], [0], [1], [0, 0, 1, 1], [], []>} : vector<64x32xf32>, vector<32x32xf32>, vector<64x32xf32> -> vector<64x32xf32>
    %c0_38 = arith.constant 0 : index
    %c0_39 = arith.constant 0 : index
    %c0_40 = arith.constant 0 : index
    %57 = vector.load %arg5[%c0_38, %c0_39, %c0_40] : memref<2x1x32xf32, #tpu.memory_space<vmem>>, vector<1x1x32xf32>
    %58 = vector.shape_cast %57 : vector<1x1x32xf32> to vector<1x32xf32>
    %59 = vector.broadcast %58 : vector<1x32xf32> to vector<64x32xf32>
    %60 = arith.addf %56, %59 : vector<64x32xf32>
    %61 = math.exp %60 : vector<64x32xf32>
    %cst_41 = arith.constant 2.000000e+00 : f32
    %62 = vector.broadcast %cst_41 : f32 to vector<64x32xf32>
    %63 = arith.addf %61, %62 : vector<64x32xf32>
    %64 = arith.mulf %61, %63 : vector<64x32xf32>
    %65 = arith.mulf %60, %64 : vector<64x32xf32>
    %cst_42 = arith.constant 2.000000e+00 : f32
    %66 = vector.broadcast %cst_42 : f32 to vector<64x32xf32>
    %67 = arith.addf %64, %66 : vector<64x32xf32>
    %68 = tpu.reciprocal %67 {approx = true} : vector<64x32xf32> -> vector<64x32xf32>
    %69 = arith.mulf %65, %68 : vector<64x32xf32>
    %cst_43 = arith.constant 2.000000e+01 : f32
    %70 = vector.broadcast %cst_43 : f32 to vector<64x32xf32>
    %71 = arith.cmpf ogt, %60, %70 : vector<64x32xf32>
    %72 = arith.select %71, %60, %69 : vector<64x32xi1>, vector<64x32xf32>
    %c1_44 = arith.constant 1 : index
    %c1_45 = arith.constant 1 : index
    %c0_46 = arith.constant 0 : index
    %c0_47 = arith.constant 0 : index
    %73 = vector.load %arg4[%c1_44, %c1_45, %c0_46, %c0_47] : memref<4x2x32x32xf32, #tpu.memory_space<vmem>>, vector<1x1x32x32xf32>
    %74 = vector.shape_cast %73 : vector<1x1x32x32xf32> to vector<32x32xf32>
    %cst_48 = arith.constant dense<0.000000e+00> : vector<64x32xf32>
    %75 = tpu.matmul %72, %74, %cst_48 {dimension_numbers = #tpu.dot_dimension_numbers<[1], [0], [0], [1], [0, 0, 1, 1], [], []>} : vector<64x32xf32>, vector<32x32xf32>, vector<64x32xf32> -> vector<64x32xf32>
    %c1_49 = arith.constant 1 : index
    %c0_50 = arith.constant 0 : index
    %c0_51 = arith.constant 0 : index
    %76 = vector.load %arg5[%c1_49, %c0_50, %c0_51] : memref<2x1x32xf32, #tpu.memory_space<vmem>>, vector<1x1x32xf32>
    %77 = vector.shape_cast %76 : vector<1x1x32xf32> to vector<1x32xf32>
    %78 = vector.broadcast %77 : vector<1x32xf32> to vector<64x32xf32>
    %79 = arith.addf %75, %78 : vector<64x32xf32>
    %80 = math.exp %79 : vector<64x32xf32>
    %cst_52 = arith.constant 2.000000e+00 : f32
    %81 = vector.broadcast %cst_52 : f32 to vector<64x32xf32>
    %82 = arith.addf %80, %81 : vector<64x32xf32>
    %83 = arith.mulf %80, %82 : vector<64x32xf32>
    %84 = arith.mulf %79, %83 : vector<64x32xf32>
    %cst_53 = arith.constant 2.000000e+00 : f32
    %85 = vector.broadcast %cst_53 : f32 to vector<64x32xf32>
    %86 = arith.addf %83, %85 : vector<64x32xf32>
    %87 = tpu.reciprocal %86 {approx = true} : vector<64x32xf32> -> vector<64x32xf32>
    %88 = arith.mulf %84, %87 : vector<64x32xf32>
    %cst_54 = arith.constant 2.000000e+01 : f32
    %89 = vector.broadcast %cst_54 : f32 to vector<64x32xf32>
    %90 = arith.cmpf ogt, %79, %89 : vector<64x32xf32>
    %91 = arith.select %90, %79, %88 : vector<64x32xi1>, vector<64x32xf32>
    %c2 = arith.constant 2 : index
    %c0_55 = arith.constant 0 : index
    %c0_56 = arith.constant 0 : index
    %92 = vector.load %arg1[%c2, %c0_55, %c0_56] : memref<4x64x1xf32, #tpu.memory_space<vmem>>, vector<1x64x1xf32>
    %93 = vector.shape_cast %92 : vector<1x64x1xf32> to vector<64x1xf32>
    %c0_57 = arith.constant 0 : index
    %c0_58 = arith.constant 0 : index
    %94 = vector.load %arg2[%c0_57, %c0_58] : memref<1x32xf32, #tpu.memory_space<vmem>>, vector<1x32xf32>
    %95 = vector.broadcast %93 : vector<64x1xf32> to vector<64x32xf32>
    %96 = vector.broadcast %94 : vector<1x32xf32> to vector<64x32xf32>
    %97 = arith.mulf %95, %96 : vector<64x32xf32>
    %c0_59 = arith.constant 0 : index
    %c0_60 = arith.constant 0 : index
    %98 = vector.load %arg3[%c0_59, %c0_60] : memref<64x32xf32, #tpu.memory_space<vmem>>, vector<64x32xf32>
    %99 = arith.addf %97, %98 : vector<64x32xf32>
    %c2_61 = arith.constant 2 : index
    %c0_62 = arith.constant 0 : index
    %c0_63 = arith.constant 0 : index
    %c0_64 = arith.constant 0 : index
    %100 = vector.load %arg4[%c2_61, %c0_62, %c0_63, %c0_64] : memref<4x2x32x32xf32, #tpu.memory_space<vmem>>, vector<1x1x32x32xf32>
    %101 = vector.shape_cast %100 : vector<1x1x32x32xf32> to vector<32x32xf32>
    %cst_65 = arith.constant dense<0.000000e+00> : vector<64x32xf32>
    %102 = tpu.matmul %99, %101, %cst_65 {dimension_numbers = #tpu.dot_dimension_numbers<[1], [0], [0], [1], [0, 0, 1, 1], [], []>} : vector<64x32xf32>, vector<32x32xf32>, vector<64x32xf32> -> vector<64x32xf32>
    %c0_66 = arith.constant 0 : index
    %c0_67 = arith.constant 0 : index
    %c0_68 = arith.constant 0 : index
    %103 = vector.load %arg5[%c0_66, %c0_67, %c0_68] : memref<2x1x32xf32, #tpu.memory_space<vmem>>, vector<1x1x32xf32>
    %104 = vector.shape_cast %103 : vector<1x1x32xf32> to vector<1x32xf32>
    %105 = vector.broadcast %104 : vector<1x32xf32> to vector<64x32xf32>
    %106 = arith.addf %102, %105 : vector<64x32xf32>
    %107 = math.exp %106 : vector<64x32xf32>
    %cst_69 = arith.constant 2.000000e+00 : f32
    %108 = vector.broadcast %cst_69 : f32 to vector<64x32xf32>
    %109 = arith.addf %107, %108 : vector<64x32xf32>
    %110 = arith.mulf %107, %109 : vector<64x32xf32>
    %111 = arith.mulf %106, %110 : vector<64x32xf32>
    %cst_70 = arith.constant 2.000000e+00 : f32
    %112 = vector.broadcast %cst_70 : f32 to vector<64x32xf32>
    %113 = arith.addf %110, %112 : vector<64x32xf32>
    %114 = tpu.reciprocal %113 {approx = true} : vector<64x32xf32> -> vector<64x32xf32>
    %115 = arith.mulf %111, %114 : vector<64x32xf32>
    %cst_71 = arith.constant 2.000000e+01 : f32
    %116 = vector.broadcast %cst_71 : f32 to vector<64x32xf32>
    %117 = arith.cmpf ogt, %106, %116 : vector<64x32xf32>
    %118 = arith.select %117, %106, %115 : vector<64x32xi1>, vector<64x32xf32>
    %c2_72 = arith.constant 2 : index
    %c1_73 = arith.constant 1 : index
    %c0_74 = arith.constant 0 : index
    %c0_75 = arith.constant 0 : index
    %119 = vector.load %arg4[%c2_72, %c1_73, %c0_74, %c0_75] : memref<4x2x32x32xf32, #tpu.memory_space<vmem>>, vector<1x1x32x32xf32>
    %120 = vector.shape_cast %119 : vector<1x1x32x32xf32> to vector<32x32xf32>
    %cst_76 = arith.constant dense<0.000000e+00> : vector<64x32xf32>
    %121 = tpu.matmul %118, %120, %cst_76 {dimension_numbers = #tpu.dot_dimension_numbers<[1], [0], [0], [1], [0, 0, 1, 1], [], []>} : vector<64x32xf32>, vector<32x32xf32>, vector<64x32xf32> -> vector<64x32xf32>
    %c1_77 = arith.constant 1 : index
    %c0_78 = arith.constant 0 : index
    %c0_79 = arith.constant 0 : index
    %122 = vector.load %arg5[%c1_77, %c0_78, %c0_79] : memref<2x1x32xf32, #tpu.memory_space<vmem>>, vector<1x1x32xf32>
    %123 = vector.shape_cast %122 : vector<1x1x32xf32> to vector<1x32xf32>
    %124 = vector.broadcast %123 : vector<1x32xf32> to vector<64x32xf32>
    %125 = arith.addf %121, %124 : vector<64x32xf32>
    %126 = math.exp %125 : vector<64x32xf32>
    %cst_80 = arith.constant 2.000000e+00 : f32
    %127 = vector.broadcast %cst_80 : f32 to vector<64x32xf32>
    %128 = arith.addf %126, %127 : vector<64x32xf32>
    %129 = arith.mulf %126, %128 : vector<64x32xf32>
    %130 = arith.mulf %125, %129 : vector<64x32xf32>
    %cst_81 = arith.constant 2.000000e+00 : f32
    %131 = vector.broadcast %cst_81 : f32 to vector<64x32xf32>
    %132 = arith.addf %129, %131 : vector<64x32xf32>
    %133 = tpu.reciprocal %132 {approx = true} : vector<64x32xf32> -> vector<64x32xf32>
    %134 = arith.mulf %130, %133 : vector<64x32xf32>
    %cst_82 = arith.constant 2.000000e+01 : f32
    %135 = vector.broadcast %cst_82 : f32 to vector<64x32xf32>
    %136 = arith.cmpf ogt, %125, %135 : vector<64x32xf32>
    %137 = arith.select %136, %125, %134 : vector<64x32xi1>, vector<64x32xf32>
    %c3 = arith.constant 3 : index
    %c0_83 = arith.constant 0 : index
    %c0_84 = arith.constant 0 : index
    %138 = vector.load %arg1[%c3, %c0_83, %c0_84] : memref<4x64x1xf32, #tpu.memory_space<vmem>>, vector<1x64x1xf32>
    %139 = vector.shape_cast %138 : vector<1x64x1xf32> to vector<64x1xf32>
    %c0_85 = arith.constant 0 : index
    %c0_86 = arith.constant 0 : index
    %140 = vector.load %arg2[%c0_85, %c0_86] : memref<1x32xf32, #tpu.memory_space<vmem>>, vector<1x32xf32>
    %141 = vector.broadcast %139 : vector<64x1xf32> to vector<64x32xf32>
    %142 = vector.broadcast %140 : vector<1x32xf32> to vector<64x32xf32>
    %143 = arith.mulf %141, %142 : vector<64x32xf32>
    %c0_87 = arith.constant 0 : index
    %c0_88 = arith.constant 0 : index
    %144 = vector.load %arg3[%c0_87, %c0_88] : memref<64x32xf32, #tpu.memory_space<vmem>>, vector<64x32xf32>
    %145 = arith.addf %143, %144 : vector<64x32xf32>
    %c3_89 = arith.constant 3 : index
    %c0_90 = arith.constant 0 : index
    %c0_91 = arith.constant 0 : index
    %c0_92 = arith.constant 0 : index
    %146 = vector.load %arg4[%c3_89, %c0_90, %c0_91, %c0_92] : memref<4x2x32x32xf32, #tpu.memory_space<vmem>>, vector<1x1x32x32xf32>
    %147 = vector.shape_cast %146 : vector<1x1x32x32xf32> to vector<32x32xf32>
    %cst_93 = arith.constant dense<0.000000e+00> : vector<64x32xf32>
    %148 = tpu.matmul %145, %147, %cst_93 {dimension_numbers = #tpu.dot_dimension_numbers<[1], [0], [0], [1], [0, 0, 1, 1], [], []>} : vector<64x32xf32>, vector<32x32xf32>, vector<64x32xf32> -> vector<64x32xf32>
    %c0_94 = arith.constant 0 : index
    %c0_95 = arith.constant 0 : index
    %c0_96 = arith.constant 0 : index
    %149 = vector.load %arg5[%c0_94, %c0_95, %c0_96] : memref<2x1x32xf32, #tpu.memory_space<vmem>>, vector<1x1x32xf32>
    %150 = vector.shape_cast %149 : vector<1x1x32xf32> to vector<1x32xf32>
    %151 = vector.broadcast %150 : vector<1x32xf32> to vector<64x32xf32>
    %152 = arith.addf %148, %151 : vector<64x32xf32>
    %153 = math.exp %152 : vector<64x32xf32>
    %cst_97 = arith.constant 2.000000e+00 : f32
    %154 = vector.broadcast %cst_97 : f32 to vector<64x32xf32>
    %155 = arith.addf %153, %154 : vector<64x32xf32>
    %156 = arith.mulf %153, %155 : vector<64x32xf32>
    %157 = arith.mulf %152, %156 : vector<64x32xf32>
    %cst_98 = arith.constant 2.000000e+00 : f32
    %158 = vector.broadcast %cst_98 : f32 to vector<64x32xf32>
    %159 = arith.addf %156, %158 : vector<64x32xf32>
    %160 = tpu.reciprocal %159 {approx = true} : vector<64x32xf32> -> vector<64x32xf32>
    %161 = arith.mulf %157, %160 : vector<64x32xf32>
    %cst_99 = arith.constant 2.000000e+01 : f32
    %162 = vector.broadcast %cst_99 : f32 to vector<64x32xf32>
    %163 = arith.cmpf ogt, %152, %162 : vector<64x32xf32>
    %164 = arith.select %163, %152, %161 : vector<64x32xi1>, vector<64x32xf32>
    %c3_100 = arith.constant 3 : index
    %c1_101 = arith.constant 1 : index
    %c0_102 = arith.constant 0 : index
    %c0_103 = arith.constant 0 : index
    %165 = vector.load %arg4[%c3_100, %c1_101, %c0_102, %c0_103] : memref<4x2x32x32xf32, #tpu.memory_space<vmem>>, vector<1x1x32x32xf32>
    %166 = vector.shape_cast %165 : vector<1x1x32x32xf32> to vector<32x32xf32>
    %cst_104 = arith.constant dense<0.000000e+00> : vector<64x32xf32>
    %167 = tpu.matmul %164, %166, %cst_104 {dimension_numbers = #tpu.dot_dimension_numbers<[1], [0], [0], [1], [0, 0, 1, 1], [], []>} : vector<64x32xf32>, vector<32x32xf32>, vector<64x32xf32> -> vector<64x32xf32>
    %c1_105 = arith.constant 1 : index
    %c0_106 = arith.constant 0 : index
    %c0_107 = arith.constant 0 : index
    %168 = vector.load %arg5[%c1_105, %c0_106, %c0_107] : memref<2x1x32xf32, #tpu.memory_space<vmem>>, vector<1x1x32xf32>
    %169 = vector.shape_cast %168 : vector<1x1x32xf32> to vector<1x32xf32>
    %170 = vector.broadcast %169 : vector<1x32xf32> to vector<64x32xf32>
    %171 = arith.addf %167, %170 : vector<64x32xf32>
    %172 = math.exp %171 : vector<64x32xf32>
    %cst_108 = arith.constant 2.000000e+00 : f32
    %173 = vector.broadcast %cst_108 : f32 to vector<64x32xf32>
    %174 = arith.addf %172, %173 : vector<64x32xf32>
    %175 = arith.mulf %172, %174 : vector<64x32xf32>
    %176 = arith.mulf %171, %175 : vector<64x32xf32>
    %cst_109 = arith.constant 2.000000e+00 : f32
    %177 = vector.broadcast %cst_109 : f32 to vector<64x32xf32>
    %178 = arith.addf %175, %177 : vector<64x32xf32>
    %179 = tpu.reciprocal %178 {approx = true} : vector<64x32xf32> -> vector<64x32xf32>
    %180 = arith.mulf %176, %179 : vector<64x32xf32>
    %cst_110 = arith.constant 2.000000e+01 : f32
    %181 = vector.broadcast %cst_110 : f32 to vector<64x32xf32>
    %182 = arith.cmpf ogt, %171, %181 : vector<64x32xf32>
    %183 = arith.select %182, %171, %180 : vector<64x32xi1>, vector<64x32xf32>
    %184 = tpu.concatenate %45, %91, %137, %183 in 0 : vector<64x32xf32>, vector<64x32xf32>, vector<64x32xf32>, vector<64x32xf32> -> vector<256x32xf32>
    %c0_111 = arith.constant 0 : index
    %c0_112 = arith.constant 0 : index
    %185 = vector.load %arg6[%c0_111, %c0_112] : memref<32x128xf32, #tpu.memory_space<vmem>>, vector<32x128xf32>
    %cst_113 = arith.constant dense<0.000000e+00> : vector<256x128xf32>
    %186 = tpu.matmul %184, %185, %cst_113 {dimension_numbers = #tpu.dot_dimension_numbers<[1], [0], [0], [1], [0, 0, 1, 1], [], []>} : vector<256x32xf32>, vector<32x128xf32>, vector<256x128xf32> -> vector<256x128xf32>
    %c0_114 = arith.constant 0 : index
    %c0_115 = arith.constant 0 : index
    %187 = vector.load %arg7[%c0_114, %c0_115] : memref<1x128xf32, #tpu.memory_space<vmem>>, vector<1x128xf32>
    %188 = vector.broadcast %187 : vector<1x128xf32> to vector<256x128xf32>
    %189 = arith.addf %186, %188 : vector<256x128xf32>
    %190 = math.exp %189 : vector<256x128xf32>
    %cst_116 = arith.constant 2.000000e+00 : f32
    %191 = vector.broadcast %cst_116 : f32 to vector<256x128xf32>
    %192 = arith.addf %190, %191 : vector<256x128xf32>
    %193 = arith.mulf %190, %192 : vector<256x128xf32>
    %194 = arith.mulf %189, %193 : vector<256x128xf32>
    %cst_117 = arith.constant 2.000000e+00 : f32
    %195 = vector.broadcast %cst_117 : f32 to vector<256x128xf32>
    %196 = arith.addf %193, %195 : vector<256x128xf32>
    %197 = tpu.reciprocal %196 {approx = true} : vector<256x128xf32> -> vector<256x128xf32>
    %198 = arith.mulf %194, %197 : vector<256x128xf32>
    %cst_118 = arith.constant 2.000000e+01 : f32
    %199 = vector.broadcast %cst_118 : f32 to vector<256x128xf32>
    %200 = arith.cmpf ogt, %189, %199 : vector<256x128xf32>
    %201 = arith.select %200, %189, %198 : vector<256x128xi1>, vector<256x128xf32>
    %c0_119 = arith.constant 0 : index
    %c0_120 = arith.constant 0 : index
    %202 = vector.load %arg8[%c0_119, %c0_120] : memref<1x128xf32, #tpu.memory_space<vmem>>, vector<1x128xf32>
    %cst_121 = arith.constant dense<0.000000e+00> : vector<1x256xf32>
    %203 = tpu.matmul %202, %201, %cst_121 {dimension_numbers = #tpu.dot_dimension_numbers<[1], [1], [0], [0], [0, 0, 1, 0], [], []>} : vector<1x128xf32>, vector<256x128xf32>, vector<1x256xf32> -> vector<1x256xf32>
    %c0_122 = arith.constant 0 : index
    %204 = memref.load %arg9[%c0_122] : memref<1xf32, #tpu.memory_space<smem>>
    %205 = vector.broadcast %204 : f32 to vector<1x256xf32>
    %206 = arith.addf %203, %205 : vector<1x256xf32>
    %c0_123 = arith.constant 0 : index
    %c0_124 = arith.constant 0 : index
    %c0_125 = arith.constant 0 : index
    %207 = vector.load %arg10[%c0_123, %c0_124, %c0_125] : memref<1x1x256xf32, #tpu.memory_space<vmem>>, vector<1x1x256xf32>
    %208 = vector.shape_cast %207 : vector<1x1x256xf32> to vector<1x256xf32>
    %209 = vector.shape_cast %206 : vector<1x256xf32> to vector<1x1x256xf32>
    tpu.vector_store %arg10[%c0_123, %c0_124, %c0_125], %209 {strides = array<i32>} : memref<1x1x256xf32, #tpu.memory_space<vmem>>, vector<1x1x256xf32>,
    return
  }
  func.func @transform_0(%arg0: i32) -> (i32, i32, i32) {
    %c0_i32 = arith.constant 0 : i32
    %c0_i32_0 = arith.constant 0 : i32
    %c0_i32_1 = arith.constant 0 : i32
    return %arg0, %c0_i32, %c0_i32_0 : i32, i32, i32
  }
  func.func @transform_1(%arg0: i32) -> (i32, i32) {
    %c0_i32 = arith.constant 0 : i32
    %c0_i32_0 = arith.constant 0 : i32
    %c0_i32_1 = arith.constant 0 : i32
    return %c0_i32, %c0_i32_0 : i32, i32
  }
  func.func @transform_2(%arg0: i32) -> (i32, i32) {
    %c0_i32 = arith.constant 0 : i32
    %c0_i32_0 = arith.constant 0 : i32
    %c0_i32_1 = arith.constant 0 : i32
    return %c0_i32, %c0_i32_0 : i32, i32
  }
  func.func @transform_3(%arg0: i32) -> (i32, i32, i32, i32) {
    %c0_i32 = arith.constant 0 : i32
    %c0_i32_0 = arith.constant 0 : i32
    %c0_i32_1 = arith.constant 0 : i32
    %c0_i32_2 = arith.constant 0 : i32
    return %arg0, %c0_i32, %c0_i32_0, %c0_i32_1 : i32, i32, i32, i32
  }
  func.func @transform_4(%arg0: i32) -> (i32, i32, i32) {
    %c0_i32 = arith.constant 0 : i32
    %c0_i32_0 = arith.constant 0 : i32
    %c0_i32_1 = arith.constant 0 : i32
    %c0_i32_2 = arith.constant 0 : i32
    return %c0_i32, %c0_i32_0, %c0_i32_1 : i32, i32, i32
  }
  func.func @transform_5(%arg0: i32) -> (i32, i32) {
    %c0_i32 = arith.constant 0 : i32
    %c0_i32_0 = arith.constant 0 : i32
    %c0_i32_1 = arith.constant 0 : i32
    return %c0_i32, %c0_i32_0 : i32, i32
  }
  func.func @transform_6(%arg0: i32) -> (i32, i32) {
    %c0_i32 = arith.constant 0 : i32
    %c0_i32_0 = arith.constant 0 : i32
    %c0_i32_1 = arith.constant 0 : i32
    return %c0_i32, %c0_i32_0 : i32, i32
  }
  func.func @transform_7(%arg0: i32) -> (i32, i32) {
    %c0_i32 = arith.constant 0 : i32
    %c0_i32_0 = arith.constant 0 : i32
    %c0_i32_1 = arith.constant 0 : i32
    return %c0_i32, %c0_i32_0 : i32, i32
  }
  func.func @transform_8(%arg0: i32) -> i32 {
    %c0_i32 = arith.constant 0 : i32
    %c0_i32_0 = arith.constant 0 : i32
    return %c0_i32 : i32
  }
  func.func @transform_9(%arg0: i32) -> (i32, i32, i32) {
    %c0_i32 = arith.constant 0 : i32
    %c0_i32_0 = arith.constant 0 : i32
    %c0_i32_1 = arith.constant 0 : i32
    return %arg0, %c0_i32, %c0_i32_0 : i32, i32, i32
  }
}

</mosaic_0001>

<bundles_post_ra>
// kernel: wno1d_forward.1
= control target key start
LH: loop header
LB: loop body
LE: loop exit
PB: predicated region body
PF: predicated region fallthrough
CT: control target
= control target key end

     0   :  { %s3130_s11 = smov 0   ;;  %s4059_s0 = inlined_call_operand.vmem [shape: f32[8,64,1], index: 0, kind: input, shape index: {}]   ;;  %s4060_s1 = inlined_call_operand.vmem [shape: f32[1,32], index: 1, kind: input, shape index: {}]   ;;  %s4061_s2 = inlined_call_operand.vmem [shape: f32[64,32], index: 2, kind: input, shape index: {}]   ;;  %s4062_s3 = inlined_call_operand.vmem [shape: f32[8,2,32,32], index: 3, kind: input, shape index: {}]   ;;  %s4063_s4 = inlined_call_operand.vmem [shape: f32[2,1,32], index: 4, kind: input, shape index: {}]   ;;  %s4064_s5 = inlined_call_operand.vmem [shape: f32[32,128], index: 5, kind: input, shape index: {}]   ;;  %s4065_s6 = inlined_call_operand.vmem [shape: f32[1,128], index: 6, kind: input, shape index: {}]   ;;  %s4066_s7 = inlined_call_operand.vmem [shape: f32[1,128], index: 7, kind: input, shape index: {}]   ;;  %s4067_s8 = inlined_call_operand.<no memory space> [shape: f32[1], index: 8, kind: input, shape index: {}]   ;;  %s4068_s9 = inlined_call_operand.vmem [shape: f32[2,1,256], index: 9, kind: output, shape index: {}]  }
   0x1   :  { %14 = sst [smem:[#allocation2]] %s4067_s8 }
   0x2 LB: > { %s3136_s12 = sadd.s32 4294967295, %s3074_s11   ;;  %p2502_p0 = scmp.ge.s32.totalorder %s3074_s11, 1  ;;  %s3074_s11 = sphi %s3130_s11, %s20_s11  }
   0x3   : > { %p302_p1 = scmp.lt.s32.totalorder %s3074_s11, 3 }
   0x5   : > { %p303_p2 = pnand %p2502_p0, %p302_p1 }
   0x6   : > { %s2503_s13 = sshll.u32 (!%p303_p2), %s3136_s12, 2  ;;  %p358_p4 = scmp.lt.s32.totalorder (!%p303_p2), %s3136_s12, 1 }
   0x7   : > { %306 = sbr.rel (%p303_p2) target bundleno = 1050 (0x41a), region = 56  ;;  %p345_p3 = scmp.lt.s32.totalorder (!%p303_p2), %s2503_s13, 7 }
   0xc   : > { %v3076_v0 = vmov 0   ;;  %s4070_s13 = smov (!%p345_p3, %s2503_s13), 7  ;;  %v3201_v43 = vld [vmem:[%s4060_s1] ss:$0 sm:$0xff]  ;;  %vm446_vm0 = vcmask 261120   ;;  %v3217_v53 = vld [vmem:[%s4061_s2 + $0x8] sm:$0xff] }
   0xd   : > { %2678 = vset.pattern.permute.xlu2 %v3076_v0  ;;  %2677 = vset.pattern.permute.xlu1 %v3076_v0  ;;  %s2661_s8 = sshll.u32 %s4070_s13, 6  ;;  %v3207_v46 = vld [vmem:[%s4061_s2] sm:$0xff]  ;;  %v3226_v58 = vld [vmem:[%s4061_s2 + $0x10] sm:$0xff]  ;;  %v3234_v63 = vld [vmem:[%s4061_s2 + $0x18] sm:$0xff]  ;;  %s4072_s12 = smov (!%p358_p4, %s3136_s12), 1 }
   0xe   : > { %2676 = vset.pattern.permute.xlu0 %v3076_v0  ;;  %s3149_s16 = scalar_lea.vmem %s4059_s0, %s2661_s8  ;;  %s3186_s19 = scalar_lea.vmem %s4062_s3, %s2661_s8 }
   0xf   : > { %v366_v1 = vld [vmem:[%s3149_s16 + $0x20] sm:$0xff]  ;;  %v364_v2 = vld [vmem:[%s3149_s16 + $0x10] sm:$0xff]  ;;  %v367_v4 = vld [vmem:[%s3149_s16 + $0x28] sm:$0xff]  ;;  %s2509_s17 = sshll.u32 %s4072_s12, 1 }
  0x10   : > { %v362_v3 = vld [vmem:[%s3149_s16] sm:$0xff]  ;;  %393 = vperm.xlu2 %2678, %v366_v1   ;;  %383 = vperm.xlu1 %2677, %v364_v2   ;;  %v365_v5 = vld [vmem:[%s3149_s16 + $0x18] sm:$0xff]  ;;  %v363_v6 = vld [vmem:[%s3149_s16 + $0x8] sm:$0xff] }
  0x11   : > { %373 = vperm.xlu0 %2676, %v362_v3   ;;  %v2531_v7 = vld [vmem:[%s3149_s16 + $0x40] sm:$0xff]  ;;  %v369_v8 = vld [vmem:[%s3149_s16 + $0x38] sm:$0xff]  ;;  %v368_v9 = vld [vmem:[%s3149_s16 + $0x30] sm:$0xff] }
  0x12   : > { %v2534_v10 = vld [vmem:[%s3149_s16 + $0x58] sm:$0xff]  ;;  %v2533_v11 = vld [vmem:[%s3149_s16 + $0x50] sm:$0xff]  ;;  %v2532_v12 = vld [vmem:[%s3149_s16 + $0x48] sm:$0xff] }
  0x13   : > { %v2537_v13 = vld [vmem:[%s3149_s16 + $0x70] sm:$0xff]  ;;  %v2536_v14 = vld [vmem:[%s3149_s16 + $0x68] sm:$0xff]  ;;  %v2535_v15 = vld [vmem:[%s3149_s16 + $0x60] sm:$0xff] }
  0x14   : > { %v2564_v16 = vld [vmem:[%s3149_s16 + $0x88] sm:$0xff]  ;;  %v2563_v17 = vld [vmem:[%s3149_s16 + $0x80] sm:$0xff]  ;;  %v2538_v18 = vld [vmem:[%s3149_s16 + $0x78] sm:$0xff] }
  0x15   : > { %v2567_v19 = vld [vmem:[%s3149_s16 + $0xa0] sm:$0xff]  ;;  %v2566_v20 = vld [vmem:[%s3149_s16 + $0x98] sm:$0xff]  ;;  %v2565_v21 = vld [vmem:[%s3149_s16 + $0x90] sm:$0xff] }
  0x16   : > { %v2595_v22 = vld [vmem:[%s3149_s16 + $0xc0] sm:$0xff]  ;;  %v2569_v23 = vld [vmem:[%s3149_s16 + $0xb0] sm:$0xff]  ;;  %v2568_v24 = vld [vmem:[%s3149_s16 + $0xa8] sm:$0xff] }
  0x17   : > { %v2597_v25 = vld [vmem:[%s3149_s16 + $0xd0] sm:$0xff]  ;;  %v2596_v26 = vld [vmem:[%s3149_s16 + $0xc8] sm:$0xff]  ;;  %v2570_v27 = vld [vmem:[%s3149_s16 + $0xb8] sm:$0xff] }
  0x18   : > { %398 = vperm.xlu2 %2678, %v367_v4   ;;  %388 = vperm.xlu1 %2677, %v365_v5   ;;  %v2600_v28 = vld [vmem:[%s3149_s16 + $0xe8] sm:$0xff]  ;;  %v2599_v29 = vld [vmem:[%s3149_s16 + $0xe0] sm:$0xff]  ;;  %v2598_v30 = vld [vmem:[%s3149_s16 + $0xd8] sm:$0xff] }
  0x19   : > { %378 = vperm.xlu0 %2676, %v363_v6   ;;  %v2602_v31 = vld [vmem:[%s3149_s16 + $0xf8] sm:$0xff]  ;;  %v440_v33 = vld [vmem:[%s3186_s19 + $0x10] sm:$0xff]  ;;  %v439_v35 = vld [vmem:[%s3186_s19 + $0x8] sm:$0xff] }
  0x1a   : > { %v441_v32 = vld [vmem:[%s3186_s19 + $0x18] sm:$0xff]  ;;  %v2601_v34 = vld [vmem:[%s3149_s16 + $0xf0] sm:$0xff]  ;;  %v438_v36 = vld [vmem:[%s3186_s19] sm:$0xff]  ;;  %s2380_s16 = sld [smem:[#allocation2]] }
  0x1b   : > { %483 = vmatpush.msra.mxu0 %v441_v32  ;;  %v2542_v37 = vld [vmem:[%s3186_s19 + $0x58] sm:$0xff]  ;;  %v2541_v38 = vld [vmem:[%s3186_s19 + $0x50] sm:$0xff]  ;;  %v2540_v40 = vld [vmem:[%s3186_s19 + $0x48] sm:$0xff] }
  0x1c   : > { %853 = vmatpush.msra.mxu2 %v2542_v37  ;;  %v2539_v41 = vld [vmem:[%s3186_s19 + $0x40] sm:$0xff]  ;;  %v2574_v6 = vld [vmem:[%s3186_s19 + $0x98] sm:$0xff] }
  0x1d   : > { %484 = vmatpush.msra.mxu0 %v440_v33 }
  0x1e   : > { %854 = vmatpush.msra.mxu2 %v2541_v38 }
  0x1f   : > { %485 = vmatpush.msra.mxu0 %v439_v35 }
  0x20   : > { %758 = vperm.xlu2 %2678, %v2531_v7   ;;  %408 = vperm.xlu1 %2677, %v369_v8   ;;  %v2573_v7 = vld [vmem:[%s3186_s19 + $0x90] sm:$0xff]  ;;  %v3247_v8 = vld [vmem:[%s4061_s2 + $0x20] sm:$0xff] }
  0x21   : > { %403 = vperm.xlu0 %2676, %v368_v9   ;;  %486 = vmatpush.msra.mxu0 %v438_v36  ;;  %v3287_v36 = vld [vmem:[%s4061_s2 + $0x38] sm:$0xff] }
  0x22   : > { %855 = vmatpush.msra.mxu2 %v2540_v40 }
  0x23   : > { %1218 = vmatpush.msrb.mxu0 %v2574_v6 }
  0x24   : > { %856 = vmatpush.msra.mxu2 %v2539_v41 }
  0x25   : > { %1219 = vmatpush.msrb.mxu0 %v2573_v7 }
  0x28   : > { %773 = vperm.xlu2 %2678, %v2534_v10   ;;  %768 = vperm.xlu1 %2677, %v2533_v11   ;;  %v2572_v11 = vld [vmem:[%s3186_s19 + $0x88] sm:$0xff] }
  0x29   : > { %763 = vperm.xlu0 %2676, %v2532_v12   ;;  %1220 = vmatpush.msrb.mxu0 %v2572_v11 }
  0x30   : > { %788 = vperm.xlu2 %2678, %v2537_v13   ;;  %783 = vperm.xlu1 %2677, %v2536_v14   ;;  %v2571_v13 = vld [vmem:[%s3186_s19 + $0x80] sm:$0xff] }
  0x31   : > { %778 = vperm.xlu0 %2676, %v2535_v15   ;;  %1221 = vmatpush.msrb.mxu0 %v2571_v13 }
  0x38   : > { %1128 = vperm.xlu2 %2678, %v2564_v16   ;;  %1123 = vperm.xlu1 %2677, %v2563_v17   ;;  %v3261_v17 = vld [vmem:[%s4061_s2 + $0x28] sm:$0xff] }
  0x39   : > { %793 = vperm.xlu0 %2676, %v2538_v18  }
  0x40   : > { %1143 = vperm.xlu2 %2678, %v2567_v19   ;;  %1138 = vperm.xlu1 %2677, %v2566_v20  }
  0x41   : > { %1133 = vperm.xlu0 %2676, %v2565_v21  }
  0x48   : > { %1488 = vperm.xlu2 %2678, %v2595_v22   ;;  %1153 = vperm.xlu1 %2677, %v2569_v23   ;;  %v2606_v22 = vld [vmem:[%s3186_s19 + $0xd8] sm:$0xff]  ;;  %v2605_v23 = vld [vmem:[%s3186_s19 + $0xd0] sm:$0xff] }
  0x49   : > { %1148 = vperm.xlu0 %2676, %v2568_v24   ;;  %1583 = vmatpush.msrb.mxu2 %v2606_v22  ;;  %v2520_v22 = vld [vmem:[%s3186_s19 + $0x30] sm:$0xff] }
  0x4b   : > { %1584 = vmatpush.msrb.mxu2 %v2605_v23  ;;  %v2519_v23 = vld [vmem:[%s3186_s19 + $0x28] sm:$0xff] }
  0x50   : > { %1498 = vperm.xlu2 %2678, %v2597_v25   ;;  %1493 = vperm.xlu1 %2677, %v2596_v26  }
  0x51   : > { %1158 = vperm.xlu0 %2676, %v2570_v27   ;;  %v3274_v27 = vld [vmem:[%s4061_s2 + $0x30] sm:$0xff] }
  0x58   : > { %1513 = vperm.xlu2 %2678, %v2600_v28   ;;  %1508 = vperm.xlu1 %2677, %v2599_v29   ;;  %v2604_v28 = vld [vmem:[%s3186_s19 + $0xc8] sm:$0xff] }
  0x59   : > { %1503 = vperm.xlu0 %2676, %v2598_v30   ;;  %1585 = vmatpush.msrb.mxu2 %v2604_v28 }
  0x60   : > { %1523 = vperm.xlu1 %2677, %v2602_v31   ;;  %v2603_v31 = vld [vmem:[%s3186_s19 + $0xc0] sm:$0xff] }
  0x61   : > { %1518 = vperm.xlu0 %2676, %v2601_v34   ;;  %1586 = vmatpush.msrb.mxu2 %v2603_v31 }
  0x6a   : > { %v394_v39 = vpop.permute.xlu2 %393 }
  0x6b   : > { %v418_v5 = vmul.f32 %v3201_v43, %v394_v39 }
  0x6d   : > { %v434_v10 = vadd.f32 %v3247_v8, %v418_v5 }
  0x72   : > { %v399_v42 = vpop.permute.xlu2 %398 }
  0x73   : > { %v419_v15 = vmul.f32 %v3201_v43, %v399_v42 }
  0x75   : > { %v435_v18 = vadd.f32 %v3261_v17, %v419_v15 }
  0x7a   : > { %v759_v44 = vpop.permute.xlu2 %758 }
  0x7b   : > { %v796_v45 = vmul.f32 %v3201_v43, %v759_v44 }
  0x7d   : > { %v804_v47 = vadd.f32 %v796_v45, %v3207_v46 }
  0x7f   : > { %2543 = vmatmul.msk.f32.vlgmr.msra.gmra.mxu2 %vm446_vm0, %v804_v47 }
  0x82   : > { %v384_v48 = vpop.permute.xlu1 %383  ;;  %v774_v14 = vpop.permute.xlu2 %773 }
  0x83   : > { %v374_v49 = vpop.permute.xlu0 %373  ;;  %v416_v57 = vmul.f32 %v3201_v43, %v384_v48  ;;  %v799_v16 = vmul.f32 %v3201_v43, %v774_v14 }
  0x84   : > { %v414_v50 = vmul.f32 %v3201_v43, %v374_v49 }
  0x85   : > { %v432_v60 = vadd.f32 %v3226_v58, %v416_v57  ;;  %v807_v19 = vadd.f32 %v799_v16, %v3234_v63 }
  0x86   : > { %v430_v51 = vadd.f32 %v3207_v46, %v414_v50 }
  0x88   : > { %2510 = vmatmul.msk.f32.vlgmr.msra.gmra.mxu0 %vm446_vm0, %v430_v51 }
  0x8a   : > { %v389_v52 = vpop.permute.xlu1 %388  ;;  %v789_v24 = vpop.permute.xlu2 %788 }
  0x8b   : > { %v379_v54 = vpop.permute.xlu0 %378  ;;  %v417_v62 = vmul.f32 %v3201_v43, %v389_v52  ;;  %v802_v40 = vmul.f32 %v3201_v43, %v789_v24 }
  0x8c   : > { %v415_v55 = vmul.f32 %v3201_v43, %v379_v54 }
  0x8d   : > { %v433_v2 = vadd.f32 %v3234_v63, %v417_v62  ;;  %v810_v45 = vadd.f32 %v802_v40, %v3274_v27 }
  0x8e   : > { %v431_v56 = vadd.f32 %v3217_v53, %v415_v55 }
  0x90   : > { %2511 = vmatmul.msk.f32.gmra.mxu0 %vm446_vm0, %v431_v56 }
  0x92   : > { %v409_v61 = vpop.permute.xlu1 %408  ;;  %v1129_v35 = vpop.permute.xlu2 %1128 }
  0x93   : > { %v404_v59 = vpop.permute.xlu0 %403  ;;  %v421_v33 = vmul.f32 %v3201_v43, %v409_v61  ;;  %v1162_v49 = vmul.f32 %v3201_v43, %v1129_v35 }
  0x94   : > { %v420_v25 = vmul.f32 %v3201_v43, %v404_v59 }
  0x95   : > { %v437_v37 = vadd.f32 %v3287_v36, %v421_v33  ;;  %v1170_v52 = vadd.f32 %v1162_v49, %v3217_v53 }
  0x96   : > { %v436_v29 = vadd.f32 %v3274_v27, %v420_v25 }
  0x98   : > { %2512 = vmatmul.msk.f32.gmra.mxu0 %vm446_vm0, %v432_v60 }
  0x9a   : > { %v769_v4 = vpop.permute.xlu1 %768  ;;  %v1144_v44 = vpop.permute.xlu2 %1143 }
  0x9b   : > { %v764_v0 = vpop.permute.xlu0 %763  ;;  %v798_v9 = vmul.f32 %v3201_v43, %v769_v4 }
  0x9c   : > { %v797_v1 = vmul.f32 %v3201_v43, %v764_v0 }
  0x9d   : > { %v806_v12 = vadd.f32 %v798_v9, %v3226_v58 }
  0x9e   : > { %v805_v3 = vadd.f32 %v797_v1, %v3217_v53 }
  0xa0   : > { %2513 = vmatmul.msk.f32.gmra.mxu0 %vm446_vm0, %v433_v2  ;;  %2544 = vmatmul.msk.f32.gmra.mxu2 %vm446_vm0, %v805_v3 }
  0xa2   : > { %v784_v20 = vpop.permute.xlu1 %783  ;;  %v1489_v55 = vpop.permute.xlu2 %1488 }
  0xa3   : > { %v779_v21 = vpop.permute.xlu0 %778  ;;  %v801_v34 = vmul.f32 %v3201_v43, %v784_v20  ;;  %v1526_v56 = vmul.f32 %v3201_v43, %v1489_v55 }
  0xa4   : > { %v800_v26 = vmul.f32 %v3201_v43, %v779_v21 }
  0xa5   : > { %v809_v38 = vadd.f32 %v801_v34, %v3261_v17  ;;  %v1534_v60 = vadd.f32 %v1526_v56, %v3207_v46 }
  0xa6   : > { %v808_v30 = vadd.f32 %v800_v26, %v3247_v8  ;;  %v2518_v26 = vld [vmem:[%s3186_s19 + $0x20] sm:$0xff] }
  0xa8   : > { %2514 = vmatmul.msk.f32.gmra.mxu0 %vm446_vm0, %v434_v10  ;;  %2545 = vmatmul.msk.f32.gmra.mxu2 %vm446_vm0, %v806_v12 }
  0xaa   : > { %v1124_v32 = vpop.permute.xlu1 %1123  ;;  %v1499_v5 = vpop.permute.xlu2 %1498 }
  0xab   : > { %v794_v39 = vpop.permute.xlu0 %793  ;;  %v1161_v41 = vmul.f32 %v3201_v43, %v1124_v32  ;;  %v1528_v6 = vmul.f32 %v3201_v43, %v1499_v5 }
  0xac   : > { %v803_v50 = vmul.f32 %v3201_v43, %v794_v39 }
  0xad   : > { %v1169_v47 = vadd.f32 %v1161_v41, %v3207_v46  ;;  %v1165_v46 = vmul.f32 %v3201_v43, %v1144_v44  ;;  %v1536_v9 = vadd.f32 %v1528_v6, %v3226_v58 }
  0xae   : > { %v811_v54 = vadd.f32 %v803_v50, %v3287_v36 }
  0xaf   : > { %v1173_v7 = vadd.f32 %v1165_v46, %v3247_v8 }
  0xb0   : > { %2515 = vmatmul.msk.f32.gmra.mxu0 %vm446_vm0, %v435_v18  ;;  %2546 = vmatmul.msk.f32.gmra.mxu2 %vm446_vm0, %v807_v19 }
  0xb2   : > { %v1139_v42 = vpop.permute.xlu1 %1138  ;;  %v1514_v19 = vpop.permute.xlu2 %1513 }
  0xb3   : > { %v1134_v48 = vpop.permute.xlu0 %1133  ;;  %v1164_v0 = vmul.f32 %v3201_v43, %v1139_v42  ;;  %v1531_v20 = vmul.f32 %v3201_v43, %v1514_v19 }
  0xb4   : > { %v1163_v57 = vmul.f32 %v3201_v43, %v1134_v48 }
  0xb5   : > { %v1172_v3 = vadd.f32 %v1164_v0, %v3234_v63  ;;  %v1539_v24 = vadd.f32 %v1531_v20, %v3261_v17 }
  0xb6   : > { %v1171_v61 = vadd.f32 %v1163_v57, %v3226_v58 }
  0xb8   : > { %2516 = vmatmul.msk.f32.gmra.mxu0 %vm446_vm0, %v436_v29  ;;  %2547 = vmatmul.msk.f32.gmra.mxu2 %vm446_vm0, %v808_v30  ;;  %v3349_v29 = vld [vmem:[%s4063_s4] ss:$0 sm:$0xff]  ;;  %v2554_v30 = vld [vmem:[%s3186_s19 + $0x78] sm:$0xff] }
  0xba   : > { %v1154_v51 = vpop.permute.xlu1 %1153 }
  0xbb   : > { %v1149_v59 = vpop.permute.xlu0 %1148  ;;  %v1167_v58 = vmul.f32 %v3201_v43, %v1154_v51 }
  0xbd   : > { %v1175_v16 = vadd.f32 %v1167_v58, %v3274_v27 }
  0xc0   : > { %2517 = vmatmul.msk.f32.gmra.mxu0 %vm446_vm0, %v437_v37  ;;  %2548 = vmatmul.msk.f32.gmra.mxu2 %vm446_vm0, %v809_v38 }
  0xc2   : > { %v1494_v62 = vpop.permute.xlu1 %1493 }
  0xc3   : > { %v1527_v1 = vmul.f32 %v3201_v43, %v1494_v62  ;;  %v1159_v2 = vpop.permute.xlu0 %1158 }
  0xc4   : > { %v1168_v21 = vmul.f32 %v3201_v43, %v1159_v2 }
  0xc5   : > { %v1535_v4 = vadd.f32 %v1527_v1, %v3217_v53  ;;  %v1166_v53 = vmul.f32 %v3201_v43, %v1149_v59  ;;  %v2552_v1 = vld [vmem:[%s3186_s19 + $0x68] sm:$0xff] }
  0xc6   : > { %v1176_v25 = vadd.f32 %v1168_v21, %v3287_v36 }
  0xc7   : > { %v1174_v12 = vadd.f32 %v1166_v53, %v3261_v17 }
  0xc8   : > { %2549 = vmatmul.msk.f32.gmra.mxu2 %vm446_vm0, %v810_v45  ;;  %2575 = vmatmul.msk.f32.vlgmr.msrb.gmra.mxu0 %vm446_vm0, %v1169_v47 }
  0xca   : > { %v1509_v14 = vpop.permute.xlu1 %1508 }
  0xcb   : > { %v1504_v10 = vpop.permute.xlu0 %1503  ;;  %v1530_v15 = vmul.f32 %v3201_v43, %v1509_v14 }
  0xcc   : > { %v1529_v11 = vmul.f32 %v3201_v43, %v1504_v10 }
  0xcd   : > { %v1538_v18 = vadd.f32 %v1530_v15, %v3247_v8 }
  0xce   : > { %v1537_v13 = vadd.f32 %v1529_v11, %v3234_v63  ;;  %v2521_v63 = vld [vmem:[%s3186_s19 + $0x38] sm:$0xff] }
  0xcf   : > { %638 = vmatpush.msra.mxu1 %v2521_v63 }
  0xd0   : > { %2550 = vmatmul.msk.f32.gmra.mxu2 %vm446_vm0, %v811_v54  ;;  %2576 = vmatmul.msk.f32.gmra.mxu0 %vm446_vm0, %v1170_v52 }
  0xd1   : > { %639 = vmatpush.msra.mxu1 %v2520_v22 }
  0xd2   : > { %v1524_v33 = vpop.permute.xlu1 %1523 }
  0xd3   : > { %640 = vmatpush.msra.mxu1 %v2519_v23  ;;  %v1519_v8 = vpop.permute.xlu0 %1518  ;;  %v1533_v35 = vmul.f32 %v3201_v43, %v1524_v33  ;;  %v2551_v33 = vld [vmem:[%s3186_s19 + $0x60] sm:$0xff] }
  0xd4   : > { %v1532_v28 = vmul.f32 %v3201_v43, %v1519_v8 }
  0xd5   : > { %641 = vmatpush.msra.mxu1 %v2518_v26  ;;  %v1541_v38 = vadd.f32 %v1533_v35, %v3287_v36 }
  0xd6   : > { %v1540_v31 = vadd.f32 %v1532_v28, %v3274_v27  ;;  %v2553_v27 = vld [vmem:[%s3186_s19 + $0x70] sm:$0xff] }
  0xd7   : > { %1003 = vmatpush.msrb.mxu1 %v2554_v30 }
  0xd8   : > { %2577 = vmatmul.msk.f32.gmra.mxu0 %vm446_vm0, %v1171_v61  ;;  %2607 = vmatmul.msk.f32.vlgmr.msrb.gmra.mxu2 %vm446_vm0, %v1534_v60 }
  0xd9   : > { %1004 = vmatpush.msrb.mxu1 %v2553_v27 }
  0xdb   : > { %1005 = vmatpush.msrb.mxu1 %v2552_v1 }
  0xdd   : > { %1006 = vmatpush.msrb.mxu1 %v2551_v33 }
  0xe0   : > { %2578 = vmatmul.msk.f32.gmra.mxu0 %vm446_vm0, %v1172_v3  ;;  %2608 = vmatmul.msk.f32.gmra.mxu2 %vm446_vm0, %v1535_v4 }
  0xe8   : > { %2579 = vmatmul.msk.f32.gmra.mxu0 %vm446_vm0, %v1173_v7  ;;  %2609 = vmatmul.msk.f32.gmra.mxu2 %vm446_vm0, %v1536_v9 }
  0xf0   : > { %2580 = vmatmul.msk.f32.gmra.mxu0 %vm446_vm0, %v1174_v12  ;;  %2610 = vmatmul.msk.f32.gmra.mxu2 %vm446_vm0, %v1537_v13 }
  0xf8   : > { %2581 = vmatmul.msk.f32.gmra.mxu0 %vm446_vm0, %v1175_v16  ;;  %2611 = vmatmul.msk.f32.gmra.mxu2 %vm446_vm0, %v1538_v18 }
 0x100   : > { %2582 = vmatmul.msk.f32.gmra.mxu0 %vm446_vm0, %v1176_v25  ;;  %2612 = vmatmul.msk.f32.gmra.mxu2 %vm446_vm0, %v1539_v24 }
 0x102   : > { %v858_v36 = vpop.f32.mrf.mxu2 }
 0x105   : > { %v488_v17 = vpop.f32.mrf.mxu0 }
 0x106   : > { %v489_v32 = vadd.f32 %v3349_v29, %v488_v17  ;;  %v3374_v17 = vadd.f32 %v3349_v29, %v858_v36 }
 0x108   : > { %v512_v34 = vmul.f32 1.442695, %v489_v32  ;;  %2613 = vmatmul.msk.f32.gmra.mxu2 %vm446_vm0, %v1540_v31  ;;  %vm576_vm1 = vcmp.gt.f32.partialorder %v489_v32, 20.0  ;;  %vm946_vm9 = vcmp.gt.f32.partialorder %v3374_v17, 20.0 }
 0x10a   : > { %2683 = vpow2.f32 %v512_v34 }
 0x10d   : > { %v491_v37 = vpop.f32.mrf.mxu0 }
 0x10e   : > { %v492_v39 = vadd.f32 %v3349_v29, %v491_v37 }
 0x110   : > { %v2684_v40 = vpop.eup %2683  ;;  %v514_v41 = vmul.f32 1.442695, %v492_v39  ;;  %2614 = vmatmul.msk.f32.gmra.mxu2 %vm446_vm0, %v1541_v38  ;;  %vm577_vm2 = vcmp.gt.f32.partialorder %v492_v39, 20.0 }
 0x111   : > { %v528_v42 = vadd.f32 2.0, %v2684_v40 }
 0x112   : > { %2685 = vpow2.f32 %v514_v41 }
 0x113   : > { %v536_v44 = vmul.f32 %v2684_v40, %v528_v42 }
 0x115   : > { %v494_v45 = vpop.f32.mrf.mxu0  ;;  %v552_v47 = vadd.f32 2.0, %v536_v44  ;;  %v544_v52 = vmul.f32 %v536_v44, %v489_v32 }
 0x116   : > { %v495_v48 = vadd.f32 %v3349_v29, %v494_v45 }
 0x117   : > { %2687 = vrcp.f32 %v552_v47 }
 0x118   : > { %v2686_v43 = vpop.eup %2685  ;;  %v516_v49 = vmul.f32 1.442695, %v495_v48  ;;  %vm578_vm3 = vcmp.gt.f32.partialorder %v495_v48, 20.0 }
 0x119   : > { %v529_v50 = vadd.f32 2.0, %v2686_v43 }
 0x11a   : > { %2689 = vpow2.f32 %v516_v49 }
 0x11b   : > { %v537_v51 = vmul.f32 %v2686_v43, %v529_v50 }
 0x11d   : > { %v2688_v54 = vpop.eup %2687  ;;  %v497_v55 = vpop.f32.mrf.mxu0  ;;  %v553_v56 = vadd.f32 2.0, %v537_v51  ;;  %v545_v4 = vmul.f32 %v537_v51, %v492_v39 }
 0x11e   : > { %v498_v57 = vadd.f32 %v3349_v29, %v497_v55  ;;  %v568_v59 = vmul.f32 %v2688_v54, %v544_v52 }
 0x11f   : > { %2691 = vrcp.f32 %v553_v56 }
 0x120   : > { %v2690_v60 = vpop.eup %2689  ;;  %v518_v61 = vmul.f32 1.442695, %v498_v57  ;;  %v584_v62 = vsel %vm576_vm1, %v489_v32, %v568_v59  ;;  %vm579_vm4 = vcmp.gt.f32.partialorder %v498_v57, 20.0 }
 0x121   : > { %2523 = vmatmul.msk.f32.vlgmr.msra.gmra.mxu1 %vm446_vm0, %v584_v62  ;;  %v530_v0 = vadd.f32 2.0, %v2690_v60 }
 0x122   : > { %2693 = vpow2.f32 %v518_v61 }
 0x123   : > { %v861_v2 = vpop.f32.mrf.mxu2  ;;  %v538_v3 = vmul.f32 %v2690_v60, %v530_v0 }
 0x124   : > { %v3386_v47 = vadd.f32 %v3349_v29, %v861_v2 }
 0x125   : > { %v2692_v5 = vpop.eup %2691  ;;  %v500_v46 = vpop.f32.mrf.mxu0  ;;  %v554_v6 = vadd.f32 2.0, %v538_v3  ;;  %v546_v58 = vmul.f32 %v538_v3, %v495_v48 }
 0x126   : > { %v501_v7 = vadd.f32 %v3349_v29, %v500_v46  ;;  %v569_v9 = vmul.f32 %v2692_v5, %v545_v4  ;;  %v884_v52 = vmul.f32 1.442695, %v3386_v47  ;;  %vm947_vm10 = vcmp.gt.f32.partialorder %v3386_v47, 20.0 }
 0x127   : > { %2695 = vrcp.f32 %v554_v6 }
 0x128   : > { %v2694_v10 = vpop.eup %2693  ;;  %v520_v53 = vmul.f32 1.442695, %v501_v7  ;;  %v585_v11 = vsel %vm577_vm2, %v492_v39, %v569_v9  ;;  %v882_v39 = vmul.f32 1.442695, %v3374_v17  ;;  %vm580_vm5 = vcmp.gt.f32.partialorder %v501_v7, 20.0 }
 0x129   : > { %2524 = vmatmul.msk.f32.gmra.mxu1 %vm446_vm0, %v585_v11  ;;  %v531_v12 = vadd.f32 2.0, %v2694_v10  ;;  %v2586_v11 = vld [vmem:[%s3186_s19 + $0xb8] sm:$0xff] }
 0x12a   : > { %2697 = vpow2.f32 %v520_v53  ;;  %1368 = vmatpush.msra.mxu1 %v2586_v11 }
 0x12b   : > { %v864_v13 = vpop.f32.mrf.mxu2  ;;  %v539_v14 = vmul.f32 %v2694_v10, %v531_v12 }
 0x12c   : > { %v3398_v61 = vadd.f32 %v3349_v29, %v864_v13 }
 0x12d   : > { %v2696_v15 = vpop.eup %2695  ;;  %v503_v16 = vpop.f32.mrf.mxu0  ;;  %v555_v18 = vadd.f32 2.0, %v539_v14  ;;  %v547_v8 = vmul.f32 %v539_v14, %v498_v57 }
 0x12e   : > { %v3367_v19 = vadd.f32 %v3349_v29, %v503_v16  ;;  %v570_v63 = vmul.f32 %v2696_v15, %v546_v58  ;;  %v886_v4 = vmul.f32 1.442695, %v3398_v61  ;;  %v2618_v15 = vld [vmem:[%s3186_s19 + $0xf8] sm:$0xff]  ;;  %vm948_vm11 = vcmp.gt.f32.partialorder %v3398_v61, 20.0 }
 0x12f   : > { %2699 = vrcp.f32 %v555_v18  ;;  %1733 = vmatpush.msra.mxu2 %v2618_v15  ;;  %v2617_v18 = vld [vmem:[%s3186_s19 + $0xf0] sm:$0xff] }
 0x130   : > { %v2698_v20 = vpop.eup %2697  ;;  %v522_v21 = vmul.f32 1.442695, %v3367_v19  ;;  %v586_v22 = vsel %vm578_vm3, %v495_v48, %v570_v63  ;;  %vm581_vm6 = vcmp.gt.f32.partialorder %v3367_v19, 20.0  ;;  %v2585_v63 = vld [vmem:[%s3186_s19 + $0xb0] sm:$0xff] }
 0x131   : > { %2525 = vmatmul.msk.f32.gmra.mxu1 %vm446_vm0, %v586_v22  ;;  %v532_v23 = vadd.f32 2.0, %v2698_v20  ;;  %1734 = vmatpush.msra.mxu2 %v2617_v18  ;;  %v2616_v22 = vld [vmem:[%s3186_s19 + $0xe8] sm:$0xff] }
 0x132   : > { %2701 = vpow2.f32 %v522_v21  ;;  %1369 = vmatpush.msra.mxu1 %v2585_v63 }
 0x133   : > { %v3371_v24 = vpop.f32.mrf.mxu2  ;;  %v540_v25 = vmul.f32 %v2698_v20, %v532_v23  ;;  %1735 = vmatpush.msra.mxu2 %v2616_v22  ;;  %v2583_v22 = vld [vmem:[%s3186_s19 + $0xa0] sm:$0xff] }
 0x134   : > { %v3410_v12 = vadd.f32 %v3349_v29, %v3371_v24 }
 0x135   : > { %v2700_v26 = vpop.eup %2699  ;;  %v506_v28 = vpop.f32.mrf.mxu0  ;;  %v556_v30 = vadd.f32 2.0, %v540_v25  ;;  %v548_v42 = vmul.f32 %v540_v25, %v501_v7 }
 0x136   : > { %v3377_v31 = vadd.f32 %v3349_v29, %v506_v28  ;;  %v571_v32 = vmul.f32 %v2700_v26, %v547_v8  ;;  %v2615_v8 = vld [vmem:[%s3186_s19 + $0xe0] sm:$0xff]  ;;  %vm949_vm13 = vcmp.gt.f32.partialorder %v3410_v12, 20.0 }
 0x137   : > { %2703 = vrcp.f32 %v556_v30  ;;  %1736 = vmatpush.msra.mxu2 %v2615_v8 }
 0x138   : > { %v2702_v34 = vpop.eup %2701  ;;  %v524_v35 = vmul.f32 1.442695, %v3377_v31  ;;  %v587_v37 = vsel %vm579_vm4, %v498_v57, %v571_v32  ;;  %vm582_vm7 = vcmp.gt.f32.partialorder %v3377_v31, 20.0 }
 0x139   : > { %2526 = vmatmul.msk.f32.gmra.mxu1 %vm446_vm0, %v587_v37  ;;  %v533_v38 = vadd.f32 2.0, %v2702_v34 }
 0x13a   : > { %2705 = vpow2.f32 %v524_v35 }
 0x13b   : > { %v3383_v40 = vpop.f32.mrf.mxu2  ;;  %v541_v41 = vmul.f32 %v2702_v34, %v533_v38  ;;  %2707 = vpow2.f32 %v882_v39 }
 0x13c   : > { %v3426_v26 = vadd.f32 %v3349_v29, %v3383_v40 }
 0x13d   : > { %v2704_v27 = vpop.eup %2703  ;;  %v509_v44 = vpop.f32.mrf.mxu0  ;;  %v557_v45 = vadd.f32 2.0, %v541_v41  ;;  %v549_v57 = vmul.f32 %v541_v41, %v3367_v19 }
 0x13e   : > { %v3389_v48 = vadd.f32 %v3349_v29, %v509_v44  ;;  %v572_v43 = vmul.f32 %v2704_v27, %v548_v42  ;;  %v890_v35 = vmul.f32 1.442695, %v3426_v26  ;;  %vm950_vm15 = vcmp.gt.f32.partialorder %v3426_v26, 20.0 }
 0x13f   : > { %2709 = vrcp.f32 %v557_v45 }
 0x140   : > { %v2706_v49 = vpop.eup %2705  ;;  %v526_v50 = vmul.f32 1.442695, %v3389_v48  ;;  %v588_v36 = vsel %vm580_vm5, %v501_v7, %v572_v43  ;;  %vm583_vm8 = vcmp.gt.f32.partialorder %v3389_v48, 20.0 }
 0x141   : > { %2527 = vmatmul.msk.f32.gmra.mxu1 %vm446_vm0, %v588_v36  ;;  %v534_v51 = vadd.f32 2.0, %v2706_v49  ;;  %v2708_v56 = vpop.eup %2707  ;;  %v2584_v36 = vld [vmem:[%s3186_s19 + $0xa8] sm:$0xff]  ;;  %s361_s19 = scalar_lea.vmem %s4068_s9, %s2509_s17 }
 0x142   : > { %2711 = vpow2.f32 %v526_v50  ;;  %v898_v0 = vadd.f32 2.0, %v2708_v56  ;;  %1370 = vmatpush.msra.mxu1 %v2584_v36 }
 0x143   : > { %v3394_v54 = vpop.f32.mrf.mxu2  ;;  %v542_v55 = vmul.f32 %v2706_v49, %v534_v51  ;;  %2713 = vpow2.f32 %v884_v52 }
 0x144   : > { %v906_v5 = vmul.f32 %v2708_v56, %v898_v0  ;;  %v3439_v42 = vadd.f32 %v3349_v29, %v3394_v54  ;;  %1371 = vmatpush.msra.mxu1 %v2583_v22 }
 0x145   : > { %v2710_v59 = vpop.eup %2709  ;;  %v558_v60 = vadd.f32 2.0, %v542_v55  ;;  %v550_v9 = vmul.f32 %v542_v55, %v3377_v31  ;;  %v1223_v55 = vpop.f32.mrf.mxu0 }
 0x146   : > { %v573_v62 = vmul.f32 %v2710_v59, %v549_v57  ;;  %v922_v14 = vadd.f32 2.0, %v906_v5  ;;  %v914_v32 = vmul.f32 %v906_v5, %v3374_v17  ;;  %v892_v49 = vmul.f32 1.442695, %v3439_v42 }
 0x147   : > { %2715 = vrcp.f32 %v558_v60  ;;  %vm951_vm2 = vcmp.gt.f32.partialorder %v3439_v42, 20.0 }
 0x148   : > { %v2712_v1 = vpop.eup %2711  ;;  %v589_v2 = vsel %vm581_vm6, %v3367_v19, %v573_v62  ;;  %2717 = vpow2.f32 %v886_v4  ;;  %v888_v19 = vmul.f32 1.442695, %v3410_v12 }
 0x149   : > { %2528 = vmatmul.msk.f32.gmra.mxu1 %vm446_vm0, %v589_v2  ;;  %v535_v3 = vadd.f32 2.0, %v2712_v1  ;;  %v2714_v7 = vpop.eup %2713 }
 0x14a   : > { %v899_v58 = vadd.f32 2.0, %v2714_v7 }
 0x14b   : > { %v3404_v46 = vpop.f32.mrf.mxu2  ;;  %v543_v6 = vmul.f32 %v2712_v1, %v535_v3 }
 0x14c   : > { %v907_v21 = vmul.f32 %v2714_v7, %v899_v58 }
 0x14d   : > { %v2716_v10 = vpop.eup %2715  ;;  %v559_v53 = vadd.f32 2.0, %v543_v6  ;;  %v551_v24 = vmul.f32 %v543_v6, %v3389_v48 }
 0x14e   : > { %v574_v13 = vmul.f32 %v2716_v10, %v550_v9  ;;  %v2718_v23 = vpop.eup %2717  ;;  %v923_v30 = vadd.f32 2.0, %v907_v21  ;;  %v915_v50 = vmul.f32 %v907_v21, %v3386_v47 }
 0x14f   : > { %2719 = vrcp.f32 %v559_v53 }
 0x150   : > { %v590_v16 = vsel %vm582_vm7, %v3377_v31, %v574_v13  ;;  %2721 = vrcp.f32 %v922_v14  ;;  %v900_v31 = vadd.f32 2.0, %v2718_v23  ;;  %v1226_v13 = vpop.f32.mrf.mxu0 }
 0x151   : > { %2529 = vmatmul.msk.f32.gmra.mxu1 %vm446_vm0, %v590_v16  ;;  %2723 = vpow2.f32 %v888_v19 }
 0x152   : > { %2725 = vrcp.f32 %v923_v30  ;;  %v908_v38 = vmul.f32 %v2718_v23, %v900_v31 }
 0x153   : > { %v3419_v20 = vpop.f32.mrf.mxu2  ;;  %2727 = vpow2.f32 %v890_v35  ;;  %v3480_v35 = vadd.f32 %v3349_v29, %v1223_v55 }
 0x154   : > { %v924_v44 = vadd.f32 2.0, %v908_v38  ;;  %v916_v6 = vmul.f32 %v908_v38, %v3398_v61  ;;  %v3465_v14 = vadd.f32 %v3349_v29, %v3419_v20 }
 0x155   : > { %v2720_v25 = vpop.eup %2719 }
 0x156   : > { %v575_v28 = vmul.f32 %v2720_v25, %v551_v24  ;;  %v2722_v34 = vpop.eup %2721  ;;  %v896_v23 = vmul.f32 1.442695, %v3465_v14  ;;  %vm953_vm6 = vcmp.gt.f32.partialorder %v3465_v14, 20.0 }
 0x157   : > { %v2724_v39 = vpop.eup %2723  ;;  %v938_v41 = vmul.f32 %v2722_v34, %v914_v32 }
 0x158   : > { %v591_v33 = vsel %vm583_vm8, %v3389_v48, %v575_v28  ;;  %v901_v45 = vadd.f32 2.0, %v2724_v39  ;;  %v2726_v43 = vpop.eup %2725  ;;  %vm1311_vm8 = vcmp.gt.f32.partialorder %v3480_v35, 20.0 }
 0x159   : > { %2530 = vmatmul.msk.f32.gmra.mxu1 %vm446_vm0, %v591_v33  ;;  %v954_v48 = vsel %vm946_vm9, %v3374_v17, %v938_v41  ;;  %v2728_v54 = vpop.eup %2727  ;;  %v939_v57 = vmul.f32 %v2726_v43, %v915_v50  ;;  %v3452_v17 = vadd.f32 %v3349_v29, %v3404_v46 }
 0x15a   : > { %v909_v52 = vmul.f32 %v2724_v39, %v901_v45  ;;  %v902_v1 = vadd.f32 2.0, %v2728_v54 }
 0x15b   : > { %v1588_v37 = vpop.f32.mrf.mxu2  ;;  %v955_v2 = vsel %vm947_vm10, %v3386_v47, %v939_v57  ;;  %v894_v5 = vmul.f32 1.442695, %v3452_v17  ;;  %vm952_vm4 = vcmp.gt.f32.partialorder %v3452_v17, 20.0 }
 0x15c   : > { %v3434_v40 = vadd.f32 %v3349_v29, %v1588_v37  ;;  %v925_v0 = vadd.f32 2.0, %v909_v52  ;;  %v910_v9 = vmul.f32 %v2728_v54, %v902_v1  ;;  %v917_v24 = vmul.f32 %v909_v52, %v3410_v12 }
 0x15e   : > { %v1612_v27 = vmul.f32 1.442695, %v3434_v40  ;;  %v926_v16 = vadd.f32 2.0, %v910_v9  ;;  %vm1676_vm12 = vcmp.gt.f32.partialorder %v3434_v40, 20.0 }
 0x160   : > { %2729 = vpow2.f32 %v1612_v27 }
 0x161   : > { %2555 = vmatmul.msk.f32.vlgmr.msrb.gmra.mxu1 %vm446_vm0, %v954_v48  ;;  %2731 = vrcp.f32 %v924_v44  ;;  %v1229_v44 = vpop.f32.mrf.mxu0 }
 0x162   : > { %2733 = vpow2.f32 %v892_v49  ;;  %v1247_v49 = vmul.f32 1.442695, %v3480_v35 }
 0x163   : > { %v1591_v51 = vpop.f32.mrf.mxu2 }
 0x164   : > { %v3448_v56 = vadd.f32 %v3349_v29, %v1591_v51 }
 0x166   : > { %v2730_v59 = vpop.eup %2729  ;;  %v1614_v60 = vmul.f32 1.442695, %v3448_v56  ;;  %vm1677_vm14 = vcmp.gt.f32.partialorder %v3448_v56, 20.0 }
 0x167   : > { %v1628_v62 = vadd.f32 2.0, %v2730_v59  ;;  %v2732_v3 = vpop.eup %2731 }
 0x168   : > { %2735 = vpow2.f32 %v1614_v60  ;;  %v2734_v10 = vpop.eup %2733  ;;  %v940_v11 = vmul.f32 %v2732_v3, %v916_v6 }
 0x169   : > { %v1636_v4 = vmul.f32 %v2730_v59, %v1628_v62  ;;  %2556 = vmatmul.msk.f32.gmra.mxu1 %vm446_vm0, %v955_v2  ;;  %2737 = vrcp.f32 %v925_v0  ;;  %v903_v18 = vadd.f32 2.0, %v2734_v10  ;;  %v3496_v62 = vadd.f32 %v3349_v29, %v1226_v13 }
 0x16a   : > { %v956_v19 = vsel %vm948_vm11, %v3398_v61, %v940_v11 }
 0x16b   : > { %v1652_v46 = vadd.f32 2.0, %v1636_v4  ;;  %v1594_v7 = vpop.f32.mrf.mxu2  ;;  %v1644_v20 = vmul.f32 %v1636_v4, %v3434_v40  ;;  %v911_v30 = vmul.f32 %v2734_v10, %v903_v18  ;;  %vm1312_vm10 = vcmp.gt.f32.partialorder %v3496_v62, 20.0 }
 0x16c   : > { %v3461_v53 = vadd.f32 %v3349_v29, %v1594_v7  ;;  %v1249_v7 = vmul.f32 1.442695, %v3496_v62 }
 0x16d   : > { %2739 = vrcp.f32 %v1652_v46  ;;  %v927_v41 = vadd.f32 2.0, %v911_v30  ;;  %v919_v11 = vmul.f32 %v911_v30, %v3439_v42 }
 0x16e   : > { %v2736_v47 = vpop.eup %2735  ;;  %2741 = vpow2.f32 %v894_v5  ;;  %v1616_v58 = vmul.f32 1.442695, %v3461_v53  ;;  %vm1678_vm1 = vcmp.gt.f32.partialorder %v3461_v53, 20.0 }
 0x16f   : > { %v1629_v15 = vadd.f32 2.0, %v2736_v47  ;;  %v2738_v63 = vpop.eup %2737 }
 0x170   : > { %2743 = vpow2.f32 %v1616_v58  ;;  %v941_v33 = vmul.f32 %v2738_v63, %v917_v24 }
 0x171   : > { %2557 = vmatmul.msk.f32.gmra.mxu1 %vm446_vm0, %v956_v19  ;;  %v1637_v21 = vmul.f32 %v2736_v47, %v1629_v15  ;;  %2745 = vrcp.f32 %v926_v16 }
 0x172   : > { %v957_v45 = vsel %vm949_vm13, %v3410_v12, %v941_v33 }
 0x173   : > { %v2740_v25 = vpop.eup %2739  ;;  %v1597_v8 = vpop.f32.mrf.mxu2  ;;  %v1653_v28 = vadd.f32 2.0, %v1637_v21  ;;  %v1645_v50 = vmul.f32 %v1637_v21, %v3448_v56 }
 0x174   : > { %v2742_v31 = vpop.eup %2741  ;;  %v3476_v61 = vadd.f32 %v3349_v29, %v1597_v8  ;;  %v1668_v32 = vmul.f32 %v2740_v25, %v1644_v20 }
 0x175   : > { %2747 = vrcp.f32 %v1653_v28  ;;  %v904_v27 = vadd.f32 2.0, %v2742_v31 }
 0x176   : > { %v2744_v34 = vpop.eup %2743  ;;  %2749 = vpow2.f32 %v896_v23  ;;  %v1618_v37 = vmul.f32 1.442695, %v3476_v61  ;;  %v1684_v38 = vsel %vm1676_vm12, %v3434_v40, %v1668_v32  ;;  %v918_v40 = vmul.f32 %v910_v9, %v3426_v26 }
 0x177   : > { %2619 = vmatmul.msk.f32.vlgmr.msra.gmra.mxu2 %vm446_vm0, %v1684_v38  ;;  %v1630_v39 = vadd.f32 2.0, %v2744_v34  ;;  %v2746_v48 = vpop.eup %2745  ;;  %v912_v54 = vmul.f32 %v2742_v31, %v904_v27  ;;  %v3506_v9 = vadd.f32 %v3349_v29, %v1229_v44  ;;  %vm1679_vm3 = vcmp.gt.f32.partialorder %v3476_v61, 20.0 }
 0x178   : > { %2751 = vpow2.f32 %v1618_v37  ;;  %v942_v59 = vmul.f32 %v2746_v48, %v918_v40 }
 0x179   : > { %2558 = vmatmul.msk.f32.gmra.mxu1 %vm446_vm0, %v957_v45  ;;  %v1638_v43 = vmul.f32 %v2744_v34, %v1630_v39  ;;  %2753 = vrcp.f32 %v927_v41  ;;  %v928_v3 = vadd.f32 2.0, %v912_v54  ;;  %v1251_v21 = vmul.f32 1.442695, %v3506_v9 }
 0x17a   : > { %v958_v5 = vsel %vm950_vm15, %v3426_v26, %v942_v59  ;;  %v920_v32 = vmul.f32 %v912_v54, %v3452_v17  ;;  %vm1313_vm12 = vcmp.gt.f32.partialorder %v3506_v9, 20.0 }
 0x17b   : > { %v2748_v36 = vpop.eup %2747  ;;  %v1600_v51 = vpop.f32.mrf.mxu2  ;;  %v1654_v52 = vadd.f32 2.0, %v1638_v43  ;;  %v1646_v10 = vmul.f32 %v1638_v43, %v3461_v53 }
 0x17c   : > { %v2750_v55 = vpop.eup %2749  ;;  %v3492_v57 = vadd.f32 %v3349_v29, %v1600_v51  ;;  %v1669_v12 = vmul.f32 %v2748_v36, %v1645_v50 }
 0x17d   : > { %2755 = vrcp.f32 %v1654_v52  ;;  %v905_v4 = vadd.f32 2.0, %v2750_v55 }
 0x17e   : > { %v2752_v60 = vpop.eup %2751  ;;  %2757 = vpow2.f32 %v1247_v49  ;;  %v1620_v0 = vmul.f32 1.442695, %v3492_v57  ;;  %v1685_v1 = vsel %vm1677_vm14, %v3448_v56, %v1669_v12  ;;  %v1232_v56 = vpop.f32.mrf.mxu0  ;;  %vm1680_vm5 = vcmp.gt.f32.partialorder %v3492_v57, 20.0 }
 0x17f   : > { %2620 = vmatmul.msk.f32.gmra.mxu2 %vm446_vm0, %v1685_v1  ;;  %v1631_v2 = vadd.f32 2.0, %v2752_v60  ;;  %v2754_v6 = vpop.eup %2753  ;;  %v913_v15 = vmul.f32 %v2750_v55, %v905_v4  ;;  %v3526_v39 = vadd.f32 %v3349_v29, %v1232_v56 }
 0x180   : > { %2759 = vpow2.f32 %v1620_v0  ;;  %v943_v19 = vmul.f32 %v2754_v6, %v919_v11 }
 0x181   : > { %2559 = vmatmul.msk.f32.gmra.mxu1 %vm446_vm0, %v958_v5  ;;  %v1639_v46 = vmul.f32 %v2752_v60, %v1631_v2  ;;  %2761 = vrcp.f32 %v928_v3  ;;  %v929_v25 = vadd.f32 2.0, %v913_v15  ;;  %v1253_v51 = vmul.f32 1.442695, %v3526_v39  ;;  %v1844_v3 = vld [vmem:[%s4064_s5 + $0x10] sm:$0xff] }
 0x182   : > { %v959_v8 = vsel %vm951_vm2, %v3439_v42, %v943_v19  ;;  %v921_v12 = vmul.f32 %v913_v15, %v3465_v14  ;;  %v1842_v19 = vld [vmem:[%s4064_s5] sm:$0xff]  ;;  %vm1314_vm13 = vcmp.gt.f32.partialorder %v3526_v39, 20.0 }
 0x183   : > { %v2756_v47 = vpop.eup %2755  ;;  %v1603_v13 = vpop.f32.mrf.mxu2  ;;  %v1655_v58 = vadd.f32 2.0, %v1639_v46  ;;  %v1647_v31 = vmul.f32 %v1639_v46, %v3476_v61 }
 0x184   : > { %v2758_v26 = vpop.eup %2757  ;;  %v3511_v16 = vadd.f32 %v3349_v29, %v1603_v13  ;;  %v1670_v18 = vmul.f32 %v2756_v47, %v1646_v10 }
 0x185   : > { %2763 = vrcp.f32 %v1655_v58  ;;  %v1263_v20 = vadd.f32 2.0, %v2758_v26  ;;  %v1843_v58 = vld [vmem:[%s4064_s5 + $0x8] sm:$0xff] }
 0x186   : > { %v2760_v63 = vpop.eup %2759  ;;  %2765 = vpow2.f32 %v1249_v7  ;;  %v1622_v22 = vmul.f32 1.442695, %v3511_v16  ;;  %v1686_v23 = vsel %vm1678_vm1, %v3461_v53, %v1670_v18  ;;  %v1235_v42 = vpop.f32.mrf.mxu0  ;;  %vm1681_vm7 = vcmp.gt.f32.partialorder %v3511_v16, 20.0 }
 0x187   : > { %2621 = vmatmul.msk.f32.gmra.mxu2 %vm446_vm0, %v1686_v23  ;;  %v1632_v24 = vadd.f32 2.0, %v2760_v63  ;;  %v2762_v28 = vpop.eup %2761  ;;  %v3523_v33 = vmul.f32 %v2758_v26, %v1263_v20  ;;  %v3543_v60 = vadd.f32 %v3349_v29, %v1235_v42  ;;  %v3577_v20 = vld [vmem:[%s4063_s4 + $0x1] ss:$0 sm:$0xff] }
 0x188   : > { %2767 = vpow2.f32 %v1622_v22  ;;  %v944_v44 = vmul.f32 %v2762_v28, %v920_v32 }
 0x189   : > { %2560 = vmatmul.msk.f32.gmra.mxu1 %vm446_vm0, %v959_v8  ;;  %v1640_v30 = vmul.f32 %v2760_v63, %v1632_v24  ;;  %2769 = vpow2.f32 %v1251_v21  ;;  %v1287_v49 = vadd.f32 2.0, %v3523_v33  ;;  %v1255_v15 = vmul.f32 1.442695, %v3543_v60 }
 0x18a   : > { %2771 = vrcp.f32 %v929_v25  ;;  %v960_v52 = vsel %vm952_vm4, %v3452_v17, %v944_v44  ;;  %v1845_v17 = vld [vmem:[%s4064_s5 + $0x18] sm:$0xff]  ;;  %v1279_v21 = vmul.f32 %v3523_v33, %v3480_v35  ;;  %vm1315_vm15 = vcmp.gt.f32.partialorder %v3543_v60, 20.0 }
 0x18b   : > { %v2764_v53 = vpop.eup %2763  ;;  %v1606_v34 = vpop.f32.mrf.mxu2  ;;  %v1656_v37 = vadd.f32 2.0, %v1640_v30  ;;  %1958 = vmatpush.msra.mxu0 %v1845_v17  ;;  %2663 = vmatpush.msra.mxu3 %v1845_v17 }
 0x18c   : > { %v2766_v38 = vpop.eup %2765  ;;  %v3529_v41 = vadd.f32 %v3349_v29, %v1606_v34  ;;  %v1671_v27 = vmul.f32 %v2764_v53, %v1647_v31 }
 0x18d   : > { %2773 = vrcp.f32 %v1656_v37  ;;  %v1264_v40 = vadd.f32 2.0, %v2766_v38  ;;  %1959 = vmatpush.msra.mxu0 %v1844_v3  ;;  %2664 = vmatpush.msra.mxu3 %v1844_v3 }
 0x18e   : > { %v2768_v45 = vpop.eup %2767  ;;  %v1624_v48 = vmul.f32 1.442695, %v3529_v41  ;;  %v1687_v43 = vsel %vm1679_vm3, %v3476_v61, %v1671_v27  ;;  %v1648_v61 = vmul.f32 %v1640_v30, %v3492_v57  ;;  %v1238_v7 = vpop.f32.mrf.mxu0  ;;  %vm1682_vm9 = vcmp.gt.f32.partialorder %v3529_v41, 20.0 }
 0x18f   : > { %2622 = vmatmul.msk.f32.gmra.mxu2 %vm446_vm0, %v1687_v43  ;;  %v1633_v50 = vadd.f32 2.0, %v2768_v45  ;;  %v2770_v36 = vpop.eup %2769  ;;  %v3545_v2 = vmul.f32 %v2766_v38, %v1264_v40  ;;  %1960 = vmatpush.msra.mxu0 %v1843_v58  ;;  %v3580_v25 = vadd.f32 %v3349_v29, %v1238_v7 }
 0x190   : > { %2775 = vpow2.f32 %v1624_v48  ;;  %v2772_v54 = vpop.eup %2771  ;;  %v1265_v11 = vadd.f32 2.0, %v2770_v36  ;;  %2665 = vmatpush.msra.mxu3 %v1843_v58 }
 0x191   : > { %2561 = vmatmul.msk.f32.gmra.mxu1 %vm446_vm0, %v960_v52  ;;  %v1641_v55 = vmul.f32 %v2768_v45, %v1633_v50  ;;  %2777 = vrcp.f32 %v1287_v49  ;;  %v945_v6 = vmul.f32 %v2772_v54, %v921_v12  ;;  %v1288_v13 = vadd.f32 2.0, %v3545_v2  ;;  %1961 = vmatpush.msra.mxu0 %v1842_v19 }
 0x192   : > { %2779 = vpow2.f32 %v1253_v51  ;;  %v1273_v23 = vmul.f32 %v2770_v36, %v1265_v11  ;;  %2666 = vmatpush.msra.mxu3 %v1842_v19  ;;  %v1257_v38 = vmul.f32 1.442695, %v3580_v25  ;;  %v1280_v49 = vmul.f32 %v3545_v2, %v3496_v62 }
 0x193   : > { %v2774_v59 = vpop.eup %2773  ;;  %v1609_v0 = vpop.f32.mrf.mxu2  ;;  %v1657_v1 = vadd.f32 2.0, %v1641_v55  ;;  %v961_v26 = vsel %vm953_vm6, %v3465_v14, %v945_v6  ;;  %v1649_v22 = vmul.f32 %v1641_v55, %v3511_v16  ;;  %vm1316_vm2 = vcmp.gt.f32.partialorder %v3580_v25, 20.0 }
 0x194   : > { %v3554_v4 = vadd.f32 %v3349_v29, %v1609_v0  ;;  %v1672_v5 = vmul.f32 %v2774_v59, %v1648_v61  ;;  %v1289_v53 = vadd.f32 2.0, %v1273_v23 }
 0x195   : > { %2781 = vrcp.f32 %v1657_v1 }
 0x196   : > { %v2776_v46 = vpop.eup %2775  ;;  %v1626_v56 = vmul.f32 1.442695, %v3554_v4  ;;  %v1688_v10 = vsel %vm1680_vm5, %v3492_v57, %v1672_v5  ;;  %v1241_v42 = vpop.f32.mrf.mxu0  ;;  %vm1683_vm11 = vcmp.gt.f32.partialorder %v3554_v4, 20.0 }
 0x197   : > { %2623 = vmatmul.msk.f32.gmra.mxu2 %vm446_vm0, %v1688_v10  ;;  %v1634_v47 = vadd.f32 2.0, %v2776_v46  ;;  %v2778_v57 = vpop.eup %2777  ;;  %v3597_v52 = vadd.f32 %v3349_v29, %v1241_v42 }
 0x198   : > { %2783 = vpow2.f32 %v1626_v56  ;;  %v2780_v63 = vpop.eup %2779  ;;  %v1303_v28 = vmul.f32 %v2778_v57, %v1279_v21 }
 0x199   : > { %2562 = vmatmul.msk.f32.gmra.mxu1 %vm446_vm0, %v961_v26  ;;  %v1642_v18 = vmul.f32 %v2776_v46, %v1634_v47  ;;  %2785 = vrcp.f32 %v1288_v13  ;;  %v1266_v33 = vadd.f32 2.0, %v2780_v63  ;;  %v1259_v17 = vmul.f32 1.442695, %v3597_v52 }
 0x19a   : > { %2787 = vpow2.f32 %v1255_v15  ;;  %v1319_v27 = vsel %vm1311_vm8, %v3480_v35, %v1303_v28  ;;  %vm1317_vm4 = vcmp.gt.f32.partialorder %v3597_v52, 20.0 }
 0x19b   : > { %v2782_v14 = vpop.eup %2781  ;;  %v1658_v24 = vadd.f32 2.0, %v1642_v18  ;;  %v1650_v43 = vmul.f32 %v1642_v18, %v3529_v41  ;;  %v1274_v50 = vmul.f32 %v2780_v63, %v1266_v33 }
 0x19c   : > { %v1673_v8 = vmul.f32 %v2782_v14, %v1649_v22 }
 0x19d   : > { %2789 = vrcp.f32 %v1658_v24  ;;  %v1290_v61 = vadd.f32 2.0, %v1274_v50 }
 0x19e   : > { %v2784_v30 = vpop.eup %2783  ;;  %v643_v31 = vpop.f32.mrf.mxu1  ;;  %v1689_v32 = vsel %vm1681_vm7, %v3511_v16, %v1673_v8  ;;  %2791 = vrcp.f32 %v1289_v53 }
 0x19f   : > { %v3585_v34 = vadd.f32 %v3577_v20, %v643_v31  ;;  %2624 = vmatmul.msk.f32.gmra.mxu2 %vm446_vm0, %v1689_v32  ;;  %v1635_v37 = vadd.f32 2.0, %v2784_v30  ;;  %v2786_v44 = vpop.eup %2785  ;;  %v1244_v6 = vpop.f32.mrf.mxu0 }
 0x1a0   : > { %v2788_v48 = vpop.eup %2787  ;;  %v1304_v35 = vmul.f32 %v2786_v44, %v1280_v49  ;;  %v3613_v13 = vadd.f32 %v3349_v29, %v1244_v6 }
 0x1a1   : > { %v667_v45 = vmul.f32 1.442695, %v3585_v34  ;;  %2587 = vmatmul.msk.f32.vlgmr.msra.gmra.mxu1 %vm446_vm0, %v1319_v27  ;;  %v1643_v16 = vmul.f32 %v2784_v30, %v1635_v37  ;;  %v1267_v12 = vadd.f32 2.0, %v2788_v48  ;;  %vm731_vm14 = vcmp.gt.f32.partialorder %v3585_v34, 20.0 }
 0x1a2   : > { %v1320_v1 = vsel %vm1312_vm10, %v3496_v62, %v1304_v35  ;;  %v1261_v22 = vmul.f32 1.442695, %v3613_v13  ;;  %vm1318_vm6 = vcmp.gt.f32.partialorder %v3613_v13, 20.0 }
 0x1a3   : > { %v2790_v40 = vpop.eup %2789  ;;  %2793 = vpow2.f32 %v667_v45  ;;  %v1659_v36 = vadd.f32 2.0, %v1643_v16  ;;  %v1651_v7 = vmul.f32 %v1643_v16, %v3554_v4  ;;  %v1275_v56 = vmul.f32 %v2788_v48, %v1267_v12 }
 0x1a4   : > { %2795 = vpow2.f32 %v1257_v38  ;;  %v1674_v51 = vmul.f32 %v2790_v40, %v1650_v43  ;;  %v2792_v0 = vpop.eup %2791 }
 0x1a5   : > { %2797 = vrcp.f32 %v1659_v36  ;;  %v1291_v57 = vadd.f32 2.0, %v1275_v56  ;;  %v1283_v43 = vmul.f32 %v1275_v56, %v3543_v60 }
 0x1a6   : > { %v646_v54 = vpop.f32.mrf.mxu1  ;;  %v1690_v55 = vsel %vm1682_vm9, %v3529_v41, %v1674_v51  ;;  %v1281_v41 = vmul.f32 %v1273_v23, %v3506_v9  ;;  %2799 = vrcp.f32 %v1290_v61 }
 0x1a7   : > { %v3602_v59 = vadd.f32 %v3577_v20, %v646_v54  ;;  %2625 = vmatmul.msk.f32.gmra.mxu2 %vm446_vm0, %v1690_v55 }
 0x1a8   : > { %v1305_v47 = vmul.f32 %v2792_v0, %v1281_v41 }
 0x1a9   : > { %v2794_v2 = vpop.eup %2793  ;;  %v669_v3 = vmul.f32 1.442695, %v3602_v59  ;;  %2588 = vmatmul.msk.f32.gmra.mxu1 %vm446_vm0, %v1320_v1  ;;  %vm732_vm1 = vcmp.gt.f32.partialorder %v3602_v59, 20.0 }
 0x1aa   : > { %v2796_v5 = vpop.eup %2795  ;;  %v683_v46 = vadd.f32 2.0, %v2794_v2  ;;  %v1321_v29 = vsel %vm1313_vm12, %v3506_v9, %v1305_v47 }
 0x1ab   : > { %v2798_v10 = vpop.eup %2797  ;;  %2801 = vpow2.f32 %v669_v3  ;;  %v1268_v18 = vadd.f32 2.0, %v2796_v5 }
 0x1ac   : > { %v691_v11 = vmul.f32 %v2794_v2, %v683_v46  ;;  %v1675_v62 = vmul.f32 %v2798_v10, %v1651_v7  ;;  %2803 = vpow2.f32 %v1259_v17  ;;  %v2800_v63 = vpop.eup %2799 }
 0x1ad   : > { %v1276_v24 = vmul.f32 %v2796_v5, %v1268_v18 }
 0x1ae   : > { %v707_v58 = vadd.f32 2.0, %v691_v11  ;;  %v649_v15 = vpop.f32.mrf.mxu1  ;;  %v1691_v26 = vsel %vm1683_vm11, %v3554_v4, %v1675_v62  ;;  %v1282_v4 = vmul.f32 %v1274_v50, %v3526_v39  ;;  %v699_v31 = vmul.f32 %v691_v11, %v3585_v34 }
 0x1af   : > { %v3618_v19 = vadd.f32 %v3577_v20, %v649_v15  ;;  %2626 = vmatmul.msk.f32.gmra.mxu2 %vm446_vm0, %v1691_v26  ;;  %v1292_v33 = vadd.f32 2.0, %v1276_v24  ;;  %v1284_v5 = vmul.f32 %v1276_v24, %v3580_v25 }
 0x1b0   : > { %2805 = vrcp.f32 %v707_v58  ;;  %v1306_v28 = vmul.f32 %v2800_v63, %v1282_v4 }
 0x1b1   : > { %v2802_v21 = vpop.eup %2801  ;;  %v671_v23 = vmul.f32 1.442695, %v3618_v19  ;;  %2589 = vmatmul.msk.f32.gmra.mxu1 %vm446_vm0, %v1321_v29  ;;  %2807 = vrcp.f32 %v1291_v57  ;;  %vm733_vm3 = vcmp.gt.f32.partialorder %v3618_v19, 20.0 }
 0x1b2   : > { %v684_v14 = vadd.f32 2.0, %v2802_v21  ;;  %v2804_v8 = vpop.eup %2803  ;;  %v1322_v44 = vsel %vm1314_vm13, %v3526_v39, %v1306_v28 }
 0x1b3   : > { %2809 = vpow2.f32 %v671_v23  ;;  %v1269_v37 = vadd.f32 2.0, %v2804_v8 }
 0x1b4   : > { %v692_v30 = vmul.f32 %v2802_v21, %v684_v14  ;;  %2811 = vpow2.f32 %v1261_v22 }
 0x1b5   : > { %v1277_v50 = vmul.f32 %v2804_v8, %v1269_v37 }
 0x1b6   : > { %v2806_v9 = vpop.eup %2805  ;;  %v652_v32 = vpop.f32.mrf.mxu1  ;;  %v708_v53 = vadd.f32 2.0, %v692_v30  ;;  %v700_v51 = vmul.f32 %v692_v30, %v3602_v59 }
 0x1b7   : > { %v3629_v38 = vadd.f32 %v3577_v20, %v652_v32  ;;  %v723_v42 = vmul.f32 %v2806_v9, %v699_v31  ;;  %v2808_v27 = vpop.eup %2807  ;;  %v1293_v61 = vadd.f32 2.0, %v1277_v50  ;;  %v1285_v29 = vmul.f32 %v1277_v50, %v3597_v52 }
 0x1b8   : > { %2813 = vrcp.f32 %v708_v53  ;;  %v1307_v39 = vmul.f32 %v2808_v27, %v1283_v43 }
 0x1b9   : > { %v2810_v45 = vpop.eup %2809  ;;  %v673_v16 = vmul.f32 1.442695, %v3629_v38  ;;  %2590 = vmatmul.msk.f32.gmra.mxu1 %vm446_vm0, %v1322_v44  ;;  %v739_v48 = vsel %vm731_vm14, %v3585_v34, %v723_v42  ;;  %2815 = vrcp.f32 %v1292_v33  ;;  %vm734_vm5 = vcmp.gt.f32.partialorder %v3629_v38, 20.0 }
 0x1ba   : > { %2627 = vmatmul.msk.f32.vlgmr.msra.gmra.mxu0 %vm446_vm0, %v739_v48  ;;  %v685_v49 = vadd.f32 2.0, %v2810_v45  ;;  %v2812_v40 = vpop.eup %2811  ;;  %v1323_v2 = vsel %vm1315_vm15, %v3543_v60, %v1307_v39 }
 0x1bb   : > { %2817 = vpow2.f32 %v673_v16  ;;  %v1270_v12 = vadd.f32 2.0, %v2812_v40 }
 0x1bc   : > { %v693_v36 = vmul.f32 %v2810_v45, %v685_v49 }
 0x1bd   : > { %v1278_v46 = vmul.f32 %v2812_v40, %v1270_v12 }
 0x1be   : > { %v2814_v35 = vpop.eup %2813  ;;  %v655_v54 = vpop.f32.mrf.mxu1  ;;  %v709_v55 = vadd.f32 2.0, %v693_v36  ;;  %v701_v56 = vmul.f32 %v693_v36, %v3618_v19 }
 0x1bf   : > { %v3641_v34 = vadd.f32 %v3577_v20, %v655_v54  ;;  %v724_v0 = vmul.f32 %v2814_v35, %v700_v51  ;;  %v2816_v1 = vpop.eup %2815  ;;  %v1294_v47 = vadd.f32 2.0, %v1278_v46  ;;  %v1286_v53 = vmul.f32 %v1278_v46, %v3613_v13 }
 0x1c0   : > { %2819 = vrcp.f32 %v709_v55  ;;  %v1308_v7 = vmul.f32 %v2816_v1, %v1284_v5 }
 0x1c1   : > { %v2818_v17 = vpop.eup %2817  ;;  %v675_v3 = vmul.f32 1.442695, %v3641_v34  ;;  %2591 = vmatmul.msk.f32.gmra.mxu1 %vm446_vm0, %v1323_v2  ;;  %v740_v41 = vsel %vm732_vm1, %v3602_v59, %v724_v0  ;;  %2821 = vrcp.f32 %v1293_v61  ;;  %vm735_vm7 = vcmp.gt.f32.partialorder %v3641_v34, 20.0 }
 0x1c2   : > { %2628 = vmatmul.msk.f32.gmra.mxu0 %vm446_vm0, %v740_v41  ;;  %v686_v6 = vadd.f32 2.0, %v2818_v17  ;;  %v1324_v26 = vsel %vm1316_vm2, %v3580_v25, %v1308_v7 }
 0x1c3   : > { %2823 = vpow2.f32 %v675_v3 }
 0x1c4   : > { %v694_v60 = vmul.f32 %v2818_v17, %v686_v6 }
 0x1c6   : > { %v2820_v10 = vpop.eup %2819  ;;  %v658_v11 = vpop.f32.mrf.mxu1  ;;  %v710_v62 = vadd.f32 2.0, %v694_v60  ;;  %v702_v25 = vmul.f32 %v694_v60, %v3629_v38 }
 0x1c7   : > { %v3653_v58 = vadd.f32 %v3577_v20, %v658_v11  ;;  %v725_v59 = vmul.f32 %v2820_v10, %v701_v56  ;;  %v2822_v15 = vpop.eup %2821 }
 0x1c8   : > { %2825 = vrcp.f32 %v710_v62  ;;  %v1309_v22 = vmul.f32 %v2822_v15, %v1285_v29 }
 0x1c9   : > { %v2824_v57 = vpop.eup %2823  ;;  %v677_v18 = vmul.f32 1.442695, %v3653_v58  ;;  %2592 = vmatmul.msk.f32.gmra.mxu1 %vm446_vm0, %v1324_v26  ;;  %v741_v63 = vsel %vm733_vm3, %v3618_v19, %v725_v59  ;;  %2827 = vrcp.f32 %v1294_v47  ;;  %vm736_vm8 = vcmp.gt.f32.partialorder %v3653_v58, 20.0 }
 0x1ca   : > { %2629 = vmatmul.msk.f32.gmra.mxu0 %vm446_vm0, %v741_v63  ;;  %v687_v21 = vadd.f32 2.0, %v2824_v57  ;;  %v1325_v30 = vsel %vm1317_vm4, %v3597_v52, %v1309_v22 }
 0x1cb   : > { %2829 = vpow2.f32 %v677_v18 }
 0x1cc   : > { %v695_v23 = vmul.f32 %v2824_v57, %v687_v21 }
 0x1ce   : > { %v2826_v4 = vpop.eup %2825  ;;  %v661_v14 = vpop.f32.mrf.mxu1  ;;  %v711_v24 = vadd.f32 2.0, %v695_v23  ;;  %v703_v27 = vmul.f32 %v695_v23, %v3641_v34 }
 0x1cf   : > { %v662_v8 = vadd.f32 %v3577_v20, %v661_v14  ;;  %v726_v28 = vmul.f32 %v2826_v4, %v702_v25  ;;  %v2828_v19 = vpop.eup %2827 }
 0x1d0   : > { %2831 = vrcp.f32 %v711_v24  ;;  %v1310_v37 = vmul.f32 %v2828_v19, %v1286_v53 }
 0x1d1   : > { %v2830_v31 = vpop.eup %2829  ;;  %v679_v9 = vmul.f32 1.442695, %v662_v8  ;;  %2593 = vmatmul.msk.f32.gmra.mxu1 %vm446_vm0, %v1325_v30  ;;  %v742_v32 = vsel %vm734_vm5, %v3629_v38, %v726_v28  ;;  %vm737_vm9 = vcmp.gt.f32.partialorder %v662_v8, 20.0 }
 0x1d2   : > { %2630 = vmatmul.msk.f32.gmra.mxu0 %vm446_vm0, %v742_v32  ;;  %v688_v33 = vadd.f32 2.0, %v2830_v31  ;;  %v1326_v38 = vsel %vm1318_vm6, %v3613_v13, %v1310_v37 }
 0x1d3   : > { %2833 = vpow2.f32 %v679_v9 }
 0x1d4   : > { %v696_v42 = vmul.f32 %v2830_v31, %v688_v33 }
 0x1d6   : > { %v2832_v52 = vpop.eup %2831  ;;  %v664_v44 = vpop.f32.mrf.mxu1  ;;  %v712_v45 = vadd.f32 2.0, %v696_v42  ;;  %v704_v36 = vmul.f32 %v696_v42, %v3653_v58 }
 0x1d7   : > { %v665_v16 = vadd.f32 %v3577_v20, %v664_v44  ;;  %v727_v48 = vmul.f32 %v2832_v52, %v703_v27 }
 0x1d8   : > { %2835 = vrcp.f32 %v712_v45 }
 0x1d9   : > { %v2834_v43 = vpop.eup %2833  ;;  %v681_v49 = vmul.f32 1.442695, %v665_v16  ;;  %2594 = vmatmul.msk.f32.gmra.mxu1 %vm446_vm0, %v1326_v38  ;;  %v743_v50 = vsel %vm735_vm7, %v3641_v34, %v727_v48  ;;  %vm738_vm10 = vcmp.gt.f32.partialorder %v665_v16, 20.0 }
 0x1da   : > { %2631 = vmatmul.msk.f32.gmra.mxu0 %vm446_vm0, %v743_v50  ;;  %v689_v40 = vadd.f32 2.0, %v2834_v43 }
 0x1db   : > { %2837 = vpow2.f32 %v681_v49 }
 0x1dc   : > { %v697_v39 = vmul.f32 %v2834_v43, %v689_v40 }
 0x1de   : > { %v2836_v51 = vpop.eup %2835  ;;  %v1008_v35 = vpop.f32.mrf.mxu1  ;;  %v713_v54 = vadd.f32 2.0, %v697_v39  ;;  %v705_v2 = vmul.f32 %v697_v39, %v662_v8 }
 0x1df   : > { %v1009_v13 = vadd.f32 %v3577_v20, %v1008_v35  ;;  %v728_v55 = vmul.f32 %v2836_v51, %v704_v36 }
 0x1e0   : > { %2839 = vrcp.f32 %v713_v54 }
 0x1e1   : > { %v2838_v61 = vpop.eup %2837  ;;  %v1032_v12 = vmul.f32 1.442695, %v1009_v13  ;;  %v744_v34 = vsel %vm736_vm8, %v3653_v58, %v728_v55  ;;  %vm1096_vm11 = vcmp.gt.f32.partialorder %v1009_v13, 20.0 }
 0x1e2   : > { %2632 = vmatmul.msk.f32.gmra.mxu0 %vm446_vm0, %v744_v34  ;;  %v690_v0 = vadd.f32 2.0, %v2838_v61 }
 0x1e3   : > { %2841 = vpow2.f32 %v1032_v12 }
 0x1e4   : > { %v698_v1 = vmul.f32 %v2838_v61, %v690_v0 }
 0x1e6   : > { %v2840_v17 = vpop.eup %2839  ;;  %v1011_v3 = vpop.f32.mrf.mxu1  ;;  %v714_v41 = vadd.f32 2.0, %v698_v1  ;;  %v706_v11 = vmul.f32 %v698_v1, %v665_v16 }
 0x1e7   : > { %v1012_v5 = vadd.f32 %v3577_v20, %v1011_v3  ;;  %v729_v6 = vmul.f32 %v2840_v17, %v705_v2 }
 0x1e8   : > { %2843 = vrcp.f32 %v714_v41 }
 0x1e9   : > { %v2842_v46 = vpop.eup %2841  ;;  %v1034_v7 = vmul.f32 1.442695, %v1012_v5  ;;  %v745_v60 = vsel %vm737_vm9, %v662_v8, %v729_v6  ;;  %vm1097_vm12 = vcmp.gt.f32.partialorder %v1012_v5, 20.0 }
 0x1ea   : > { %v1048_v56 = vadd.f32 2.0, %v2842_v46  ;;  %2633 = vmatmul.msk.f32.gmra.mxu0 %vm446_vm0, %v745_v60 }
 0x1eb   : > { %2845 = vpow2.f32 %v1034_v7 }
 0x1ec   : > { %v1056_v10 = vmul.f32 %v2842_v46, %v1048_v56 }
 0x1ee   : > { %v2844_v62 = vpop.eup %2843  ;;  %v1072_v47 = vadd.f32 2.0, %v1056_v10  ;;  %v1014_v58 = vpop.f32.mrf.mxu1  ;;  %v1064_v21 = vmul.f32 %v1056_v10, %v1009_v13 }
 0x1ef   : > { %v1015_v59 = vadd.f32 %v3577_v20, %v1014_v58  ;;  %v730_v15 = vmul.f32 %v2844_v62, %v706_v11 }
 0x1f0   : > { %2847 = vrcp.f32 %v1072_v47 }
 0x1f1   : > { %v2846_v26 = vpop.eup %2845  ;;  %v1036_v57 = vmul.f32 1.442695, %v1015_v59  ;;  %v746_v18 = vsel %vm738_vm10, %v665_v16, %v730_v15  ;;  %vm1098_vm13 = vcmp.gt.f32.partialorder %v1015_v59, 20.0 }
 0x1f2   : > { %2634 = vmatmul.msk.f32.gmra.mxu0 %vm446_vm0, %v746_v18  ;;  %v1049_v63 = vadd.f32 2.0, %v2846_v26 }
 0x1f3   : > { %2849 = vpow2.f32 %v1036_v57 }
 0x1f4   : > { %v1057_v29 = vmul.f32 %v2846_v26, %v1049_v63 }
 0x1f6   : > { %v2848_v22 = vpop.eup %2847  ;;  %v1017_v23 = vpop.f32.mrf.mxu1  ;;  %v1073_v25 = vadd.f32 2.0, %v1057_v29  ;;  %v1065_v31 = vmul.f32 %v1057_v29, %v1012_v5 }
 0x1f7   : > { %v1018_v4 = vadd.f32 %v3577_v20, %v1017_v23  ;;  %v1088_v14 = vmul.f32 %v2848_v22, %v1064_v21 }
 0x1f8   : > { %2851 = vrcp.f32 %v1073_v25 }
 0x1f9   : > { %v2850_v24 = vpop.eup %2849  ;;  %v1038_v8 = vmul.f32 1.442695, %v1018_v4  ;;  %v1104_v28 = vsel %vm1096_vm11, %v1009_v13, %v1088_v14  ;;  %vm1099_vm14 = vcmp.gt.f32.partialorder %v1018_v4, 20.0 }
 0x1fa   : > { %2635 = vmatmul.msk.f32.gmra.mxu0 %vm446_vm0, %v1104_v28  ;;  %v1050_v19 = vadd.f32 2.0, %v2850_v24 }
 0x1fb   : > { %2853 = vpow2.f32 %v1038_v8 }
 0x1fc   : > { %v1058_v30 = vmul.f32 %v2850_v24, %v1050_v19 }
 0x1fe   : > { %v2852_v9 = vpop.eup %2851  ;;  %v1020_v32 = vpop.f32.mrf.mxu1  ;;  %v1074_v53 = vadd.f32 2.0, %v1058_v30  ;;  %v1066_v16 = vmul.f32 %v1058_v30, %v1015_v59 }
 0x1ff   : > { %v1021_v33 = vadd.f32 %v3577_v20, %v1020_v32  ;;  %v1089_v37 = vmul.f32 %v2852_v9, %v1065_v31 }
 0x200   : > { %2855 = vrcp.f32 %v1074_v53 }
 0x201   : > { %v2854_v42 = vpop.eup %2853  ;;  %v1040_v27 = vmul.f32 1.442695, %v1021_v33  ;;  %v1105_v52 = vsel %vm1097_vm12, %v1012_v5, %v1089_v37  ;;  %vm1100_vm15 = vcmp.gt.f32.partialorder %v1021_v33, 20.0 }
 0x202   : > { %2636 = vmatmul.msk.f32.vlgmr.msra.gmra.mxu3 %vm446_vm0, %v1105_v52  ;;  %v1051_v44 = vadd.f32 2.0, %v2854_v42 }
 0x203   : > { %2857 = vpow2.f32 %v1040_v27 }
 0x204   : > { %v1059_v45 = vmul.f32 %v2854_v42, %v1051_v44 }
 0x206   : > { %v2856_v48 = vpop.eup %2855  ;;  %v1023_v38 = vpop.f32.mrf.mxu1  ;;  %v1075_v43 = vadd.f32 2.0, %v1059_v45  ;;  %v1067_v54 = vmul.f32 %v1059_v45, %v1018_v4 }
 0x207   : > { %v1024_v49 = vadd.f32 %v3577_v20, %v1023_v38  ;;  %v1090_v50 = vmul.f32 %v2856_v48, %v1066_v16 }
 0x208   : > { %2859 = vrcp.f32 %v1075_v43 }
 0x209   : > { %v2858_v40 = vpop.eup %2857  ;;  %v1042_v39 = vmul.f32 1.442695, %v1024_v49  ;;  %v1106_v36 = vsel %vm1098_vm13, %v1015_v59, %v1090_v50  ;;  %vm1101_vm1 = vcmp.gt.f32.partialorder %v1024_v49, 20.0 }
 0x20a   : > { %2637 = vmatmul.msk.f32.gmra.mxu3 %vm446_vm0, %v1106_v36  ;;  %v1052_v51 = vadd.f32 2.0, %v2858_v40 }
 0x20b   : > { %2861 = vpow2.f32 %v1042_v39 }
 0x20c   : > { %v1060_v35 = vmul.f32 %v2858_v40, %v1052_v51 }
 0x20e   : > { %v2860_v13 = vpop.eup %2859  ;;  %v1026_v55 = vpop.f32.mrf.mxu1  ;;  %v1076_v61 = vadd.f32 2.0, %v1060_v35  ;;  %v1068_v41 = vmul.f32 %v1060_v35, %v1021_v33 }
 0x20f   : > { %v1027_v12 = vadd.f32 %v3577_v20, %v1026_v55  ;;  %v1091_v34 = vmul.f32 %v2860_v13, %v1067_v54 }
 0x210   : > { %2863 = vrcp.f32 %v1076_v61 }
 0x211   : > { %v2862_v0 = vpop.eup %2861  ;;  %v1044_v1 = vmul.f32 1.442695, %v1027_v12  ;;  %v1107_v2 = vsel %vm1099_vm14, %v1018_v4, %v1091_v34  ;;  %vm1102_vm2 = vcmp.gt.f32.partialorder %v1027_v12, 20.0  ;;  %v1738_v34 = vpop.f32.mrf.mxu2 }
 0x212   : > { %2638 = vmatmul.msk.f32.gmra.mxu3 %vm446_vm0, %v1107_v2  ;;  %v1053_v17 = vadd.f32 2.0, %v2862_v0 }
 0x213   : > { %2865 = vpow2.f32 %v1044_v1 }
 0x214   : > { %v1061_v3 = vmul.f32 %v2862_v0, %v1053_v17 }
 0x216   : > { %v2864_v5 = vpop.eup %2863  ;;  %v1029_v6 = vpop.f32.mrf.mxu1  ;;  %v1077_v46 = vadd.f32 2.0, %v1061_v3  ;;  %v1069_v58 = vmul.f32 %v1061_v3, %v1024_v49 }
 0x217   : > { %v1030_v7 = vadd.f32 %v3577_v20, %v1029_v6  ;;  %v1092_v60 = vmul.f32 %v2864_v5, %v1068_v41 }
 0x218   : > { %2867 = vrcp.f32 %v1077_v46 }
 0x219   : > { %v2866_v56 = vpop.eup %2865  ;;  %v1046_v10 = vmul.f32 1.442695, %v1030_v7  ;;  %v1108_v11 = vsel %vm1100_vm15, %v1021_v33, %v1092_v60  ;;  %vm1103_vm3 = vcmp.gt.f32.partialorder %v1030_v7, 20.0 }
 0x21a   : > { %2639 = vmatmul.msk.f32.gmra.mxu3 %vm446_vm0, %v1108_v11  ;;  %v1054_v62 = vadd.f32 2.0, %v2866_v56 }
 0x21b   : > { %2869 = vpow2.f32 %v1046_v10 }
 0x21c   : > { %v1062_v47 = vmul.f32 %v2866_v56, %v1054_v62 }
 0x21e   : > { %v2868_v59 = vpop.eup %2867  ;;  %v1373_v15 = vpop.f32.mrf.mxu1  ;;  %v1078_v26 = vadd.f32 2.0, %v1062_v47  ;;  %v1070_v25 = vmul.f32 %v1062_v47, %v1027_v12 }
 0x21f   : > { %v1374_v57 = vadd.f32 %v3577_v20, %v1373_v15  ;;  %v1093_v18 = vmul.f32 %v2868_v59, %v1069_v58  ;;  %v1741_v47 = vpop.f32.mrf.mxu2 }
 0x220   : > { %2871 = vrcp.f32 %v1078_v26 }
 0x221   : > { %v2870_v63 = vpop.eup %2869  ;;  %v1397_v29 = vmul.f32 1.442695, %v1374_v57  ;;  %v1109_v21 = vsel %vm1101_vm1, %v1024_v49, %v1093_v18  ;;  %vm1461_vm4 = vcmp.gt.f32.partialorder %v1374_v57, 20.0 }
 0x222   : > { %2640 = vmatmul.msk.f32.gmra.mxu3 %vm446_vm0, %v1109_v21  ;;  %v1055_v22 = vadd.f32 2.0, %v2870_v63 }
 0x223   : > { %2873 = vpow2.f32 %v1397_v29 }
 0x224   : > { %v1063_v23 = vmul.f32 %v2870_v63, %v1055_v22  ;;  %v3712_v22 = vadd.f32 %v3577_v20, %v1738_v34 }
 0x226   : > { %v2872_v4 = vpop.eup %2871  ;;  %v1376_v14 = vpop.f32.mrf.mxu1  ;;  %v1079_v24 = vadd.f32 2.0, %v1063_v23  ;;  %v1071_v53 = vmul.f32 %v1063_v23, %v1030_v7  ;;  %vm1826_vm12 = vcmp.gt.f32.partialorder %v3712_v22, 20.0 }
 0x227   : > { %v1377_v8 = vadd.f32 %v3577_v20, %v1376_v14  ;;  %v1094_v28 = vmul.f32 %v2872_v4, %v1070_v25 }
 0x228   : > { %2875 = vrcp.f32 %v1079_v24 }
 0x229   : > { %v2874_v19 = vpop.eup %2873  ;;  %v1399_v30 = vmul.f32 1.442695, %v1377_v8  ;;  %v1110_v31 = vsel %vm1102_vm2, %v1027_v12, %v1094_v28  ;;  %vm1462_vm5 = vcmp.gt.f32.partialorder %v1377_v8, 20.0 }
 0x22a   : > { %2641 = vmatmul.msk.f32.gmra.mxu3 %vm446_vm0, %v1110_v31  ;;  %v1413_v9 = vadd.f32 2.0, %v2874_v19 }
 0x22b   : > { %2877 = vpow2.f32 %v1399_v30 }
 0x22c   : > { %v1421_v32 = vmul.f32 %v2874_v19, %v1413_v9  ;;  %v1762_v19 = vmul.f32 1.442695, %v3712_v22 }
 0x22e   : > { %v2876_v33 = vpop.eup %2875  ;;  %v1379_v37 = vpop.f32.mrf.mxu1  ;;  %v1437_v42 = vadd.f32 2.0, %v1421_v32  ;;  %v1429_v43 = vmul.f32 %v1421_v32, %v1374_v57 }
 0x22f   : > { %v1380_v27 = vadd.f32 %v3577_v20, %v1379_v37  ;;  %v1095_v52 = vmul.f32 %v2876_v33, %v1071_v53  ;;  %v3718_v33 = vadd.f32 %v3577_v20, %v1741_v47 }
 0x230   : > { %2879 = vrcp.f32 %v1437_v42 }
 0x231   : > { %v2878_v44 = vpop.eup %2877  ;;  %v1401_v45 = vmul.f32 1.442695, %v1380_v27  ;;  %v1111_v16 = vsel %vm1103_vm3, %v1030_v7, %v1095_v52  ;;  %vm1463_vm6 = vcmp.gt.f32.partialorder %v1380_v27, 20.0  ;;  %vm1827_vm13 = vcmp.gt.f32.partialorder %v3718_v33, 20.0 }
 0x232   : > { %2642 = vmatmul.msk.f32.gmra.mxu3 %vm446_vm0, %v1111_v16  ;;  %v1414_v48 = vadd.f32 2.0, %v2878_v44  ;;  %v1764_v16 = vmul.f32 1.442695, %v3718_v33 }
 0x233   : > { %2881 = vpow2.f32 %v1401_v45 }
 0x234   : > { %v1422_v38 = vmul.f32 %v2878_v44, %v1414_v48 }
 0x236   : > { %v2880_v49 = vpop.eup %2879  ;;  %v1382_v50 = vpop.f32.mrf.mxu1  ;;  %v1438_v40 = vadd.f32 2.0, %v1422_v38  ;;  %v1430_v61 = vmul.f32 %v1422_v38, %v1377_v8 }
 0x237   : > { %v1383_v39 = vadd.f32 %v3577_v20, %v1382_v50  ;;  %v1453_v36 = vmul.f32 %v2880_v49, %v1429_v43 }
 0x238   : > { %2883 = vrcp.f32 %v1438_v40 }
 0x239   : > { %v2882_v51 = vpop.eup %2881  ;;  %v1403_v35 = vmul.f32 1.442695, %v1383_v39  ;;  %v1469_v54 = vsel %vm1461_vm4, %v1374_v57, %v1453_v36  ;;  %vm1464_vm7 = vcmp.gt.f32.partialorder %v1383_v39, 20.0 }
 0x23a   : > { %2643 = vmatmul.msk.f32.gmra.mxu3 %vm446_vm0, %v1469_v54  ;;  %v1415_v13 = vadd.f32 2.0, %v2882_v51 }
 0x23b   : > { %2885 = vpow2.f32 %v1403_v35 }
 0x23c   : > { %v1423_v55 = vmul.f32 %v2882_v51, %v1415_v13 }
 0x23e   : > { %v2884_v12 = vpop.eup %2883  ;;  %v1385_v0 = vpop.f32.mrf.mxu1  ;;  %v1439_v1 = vadd.f32 2.0, %v1423_v55  ;;  %v1431_v7 = vmul.f32 %v1423_v55, %v1380_v27 }
 0x23f   : > { %v1386_v2 = vadd.f32 %v3577_v20, %v1385_v0  ;;  %v1454_v17 = vmul.f32 %v2884_v12, %v1430_v61 }
 0x240   : > { %2887 = vrcp.f32 %v1439_v1 }
 0x241   : > { %v2886_v3 = vpop.eup %2885  ;;  %v1405_v41 = vmul.f32 1.442695, %v1386_v2  ;;  %v1470_v5 = vsel %vm1462_vm5, %v1377_v8, %v1454_v17  ;;  %v1744_v8 = vpop.f32.mrf.mxu2  ;;  %vm1465_vm8 = vcmp.gt.f32.partialorder %v1386_v2, 20.0 }
 0x242   : > { %2644 = vmatmul.msk.f32.gmra.mxu3 %vm446_vm0, %v1470_v5  ;;  %v1416_v6 = vadd.f32 2.0, %v2886_v3 }
 0x243   : > { %2889 = vpow2.f32 %v1405_v41 }
 0x244   : > { %v1424_v46 = vmul.f32 %v2886_v3, %v1416_v6 }
 0x246   : > { %v2888_v60 = vpop.eup %2887  ;;  %v1388_v56 = vpop.f32.mrf.mxu1  ;;  %v1440_v10 = vadd.f32 2.0, %v1424_v46  ;;  %v1432_v18 = vmul.f32 %v1424_v46, %v1383_v39 }
 0x247   : > { %v1389_v11 = vadd.f32 %v3577_v20, %v1388_v56  ;;  %v1455_v62 = vmul.f32 %v2888_v60, %v1431_v7 }
 0x248   : > { %2891 = vrcp.f32 %v1440_v10 }
 0x249   : > { %v2890_v58 = vpop.eup %2889  ;;  %v1407_v59 = vmul.f32 1.442695, %v1389_v11  ;;  %v1471_v15 = vsel %vm1463_vm6, %v1380_v27, %v1455_v62  ;;  %v1747_v48 = vpop.f32.mrf.mxu2  ;;  %vm1466_vm9 = vcmp.gt.f32.partialorder %v1389_v11, 20.0 }
 0x24a   : > { %2645 = vmatmul.msk.f32.gmra.mxu3 %vm446_vm0, %v1471_v15  ;;  %v1417_v26 = vadd.f32 2.0, %v2890_v58  ;;  %v3729_v3 = vadd.f32 %v3577_v20, %v1747_v48  ;;  %v3733_v62 = vpop.f32.mrf.mxu0 }
 0x24b   : > { %2893 = vpow2.f32 %v1407_v59 }
 0x24c   : > { %v1425_v57 = vmul.f32 %v2890_v58, %v1417_v26  ;;  %v1768_v7 = vmul.f32 1.442695, %v3729_v3  ;;  %vm1829_vm15 = vcmp.gt.f32.partialorder %v3729_v3, 20.0 }
 0x24e   : > { %v2892_v63 = vpop.eup %2891  ;;  %v1391_v29 = vpop.f32.mrf.mxu1  ;;  %v1441_v21 = vadd.f32 2.0, %v1425_v57  ;;  %v1433_v31 = vmul.f32 %v1425_v57, %v1386_v2 }
 0x24f   : > { %v1392_v23 = vadd.f32 %v3577_v20, %v1391_v29  ;;  %v1456_v25 = vmul.f32 %v2892_v63, %v1432_v18 }
 0x250   : > { %2895 = vrcp.f32 %v1441_v21 }
 0x251   : > { %v2894_v4 = vpop.eup %2893  ;;  %v1409_v14 = vmul.f32 1.442695, %v1392_v23  ;;  %v1472_v24 = vsel %vm1464_vm7, %v1383_v39, %v1456_v25  ;;  %v3724_v39 = vadd.f32 %v3577_v20, %v1744_v8  ;;  %vm1467_vm10 = vcmp.gt.f32.partialorder %v1392_v23, 20.0 }
 0x252   : > { %2646 = vmatmul.msk.f32.gmra.mxu3 %vm446_vm0, %v1472_v24  ;;  %v1418_v28 = vadd.f32 2.0, %v2894_v4 }
 0x253   : > { %2897 = vpow2.f32 %v1409_v14  ;;  %v1766_v55 = vmul.f32 1.442695, %v3724_v39  ;;  %v3744_v14 = vpop.f32.mrf.mxu0  ;;  %vm1828_vm14 = vcmp.gt.f32.partialorder %v3724_v39, 20.0 }
 0x254   : > { %v1426_v30 = vmul.f32 %v2894_v4, %v1418_v28  ;;  %2899 = vpow2.f32 %v1762_v19 }
 0x256   : > { %v2896_v9 = vpop.eup %2895  ;;  %v1394_v32 = vpop.f32.mrf.mxu1  ;;  %v1442_v53 = vadd.f32 2.0, %v1426_v30  ;;  %v1434_v49 = vmul.f32 %v1426_v30, %v1389_v11 }
 0x257   : > { %v1395_v37 = vadd.f32 %v3577_v20, %v1394_v32  ;;  %v1457_v42 = vmul.f32 %v2896_v9, %v1433_v31 }
 0x258   : > { %2901 = vrcp.f32 %v1442_v53 }
 0x259   : > { %v2898_v27 = vpop.eup %2897  ;;  %v1411_v52 = vmul.f32 1.442695, %v1395_v37  ;;  %v1473_v44 = vsel %vm1465_vm8, %v1386_v2, %v1457_v42  ;;  %v1750_v2 = vpop.f32.mrf.mxu2  ;;  %vm1468_vm11 = vcmp.gt.f32.partialorder %v1395_v37, 20.0 }
 0x25a   : > { %2647 = vmatmul.msk.f32.gmra.mxu3 %vm446_vm0, %v1473_v44  ;;  %v1419_v45 = vadd.f32 2.0, %v2898_v27  ;;  %v2900_v43 = vpop.eup %2899  ;;  %v3736_v47 = vadd.f32 %v3577_v20, %v1750_v2 }
 0x25b   : > { %2903 = vpow2.f32 %v1411_v52  ;;  %v1778_v51 = vadd.f32 2.0, %v2900_v43 }
 0x25c   : > { %v1427_v38 = vmul.f32 %v2898_v27, %v1419_v45  ;;  %2905 = vpow2.f32 %v1764_v16  ;;  %v1770_v63 = vmul.f32 1.442695, %v3736_v47  ;;  %v3758_v45 = vpop.f32.mrf.mxu0  ;;  %vm1830_vm1 = vcmp.gt.f32.partialorder %v3736_v47, 20.0 }
 0x25d   : > { %v1786_v12 = vmul.f32 %v2900_v43, %v1778_v51 }
 0x25e   : > { %v2902_v50 = vpop.eup %2901  ;;  %v1443_v40 = vadd.f32 2.0, %v1427_v38  ;;  %v1435_v0 = vmul.f32 %v1427_v38, %v1392_v23 }
 0x25f   : > { %v1458_v36 = vmul.f32 %v2902_v50, %v1434_v49  ;;  %v1802_v5 = vadd.f32 2.0, %v1786_v12  ;;  %v1794_v29 = vmul.f32 %v1786_v12, %v3712_v22 }
 0x260   : > { %2907 = vrcp.f32 %v1443_v40 }
 0x261   : > { %v2904_v35 = vpop.eup %2903  ;;  %v1474_v54 = vsel %vm1466_vm9, %v1389_v11, %v1458_v36  ;;  %2909 = vpow2.f32 %v1766_v55  ;;  %v1753_v59 = vpop.f32.mrf.mxu2 }
 0x262   : > { %2648 = vmatmul.msk.f32.gmra.mxu3 %vm446_vm0, %v1474_v54  ;;  %v1420_v13 = vadd.f32 2.0, %v2904_v35  ;;  %v2906_v34 = vpop.eup %2905  ;;  %v3742_v4 = vadd.f32 %v3577_v20, %v1753_v59 }
 0x263   : > { %v1779_v6 = vadd.f32 2.0, %v2906_v34 }
 0x264   : > { %v1428_v61 = vmul.f32 %v2904_v35, %v1420_v13  ;;  %v1772_v31 = vmul.f32 1.442695, %v3742_v4  ;;  %vm1831_vm2 = vcmp.gt.f32.partialorder %v3742_v4, 20.0 }
 0x265   : > { %v1787_v60 = vmul.f32 %v2906_v34, %v1779_v6 }
 0x266   : > { %v2908_v1 = vpop.eup %2907  ;;  %v1444_v17 = vadd.f32 2.0, %v1428_v61  ;;  %v1436_v10 = vmul.f32 %v1428_v61, %v1395_v37  ;;  %v3772_v61 = vpop.f32.mrf.mxu0 }
 0x267   : > { %v1459_v41 = vmul.f32 %v2908_v1, %v1435_v0  ;;  %v2910_v56 = vpop.eup %2909  ;;  %v1803_v15 = vadd.f32 2.0, %v1787_v60  ;;  %v1795_v9 = vmul.f32 %v1787_v60, %v3718_v33 }
 0x268   : > { %2911 = vrcp.f32 %v1444_v17  ;;  %v1780_v26 = vadd.f32 2.0, %v2910_v56 }
 0x269   : > { %v1475_v46 = vsel %vm1467_vm10, %v1392_v23, %v1459_v41  ;;  %2913 = vrcp.f32 %v1802_v5  ;;  %v1756_v30 = vpop.f32.mrf.mxu2 }
 0x26a   : > { %2649 = vmatmul.msk.f32.gmra.mxu3 %vm446_vm0, %v1475_v46  ;;  %2915 = vpow2.f32 %v1768_v7  ;;  %v1788_v21 = vmul.f32 %v2910_v56, %v1780_v26 }
 0x26b   : > { %2917 = vrcp.f32 %v1803_v15 }
 0x26c   : > { %2919 = vpow2.f32 %v1770_v63  ;;  %v1804_v24 = vadd.f32 2.0, %v1788_v21  ;;  %v1796_v48 = vmul.f32 %v1788_v21, %v3724_v39 }
 0x26e   : > { %v2912_v11 = vpop.eup %2911  ;;  %2921 = vrcp.f32 %v1804_v24  ;;  %v3780_v56 = vpop.f32.mrf.mxu0 }
 0x26f   : > { %v1460_v58 = vmul.f32 %v2912_v11, %v1436_v10  ;;  %v2914_v18 = vpop.eup %2913  ;;  %2923 = vpow2.f32 %v1772_v31 }
 0x270   : > { %v2916_v23 = vpop.eup %2915  ;;  %v1818_v25 = vmul.f32 %v2914_v18, %v1794_v29 }
 0x271   : > { %v1476_v57 = vsel %vm1468_vm11, %v1395_v37, %v1460_v58  ;;  %v1781_v8 = vadd.f32 2.0, %v2916_v23  ;;  %v2918_v19 = vpop.eup %2917  ;;  %v3067_v37 = vld [vmem:[%s4063_s4 + $0x1] ss:$0 sm:$0xff]  ;;  %v1759_v38 = vpop.f32.mrf.mxu2 }
 0x272   : > { %2650 = vmatmul.msk.f32.gmra.mxu3 %vm446_vm0, %v1476_v57  ;;  %v1834_v28 = vsel %vm1826_vm12, %v3712_v22, %v1818_v25  ;;  %v2920_v20 = vpop.eup %2919  ;;  %v1819_v53 = vmul.f32 %v2918_v19, %v1795_v9  ;;  %v3754_v42 = vadd.f32 %v3067_v37, %v1756_v30  ;;  %v3765_v36 = vadd.f32 %v3067_v37, %v1759_v38 }
 0x273   : > { %v1789_v32 = vmul.f32 %v2916_v23, %v1781_v8  ;;  %v1782_v27 = vadd.f32 2.0, %v2920_v20 }
 0x274   : > { %v1835_v52 = vsel %vm1827_vm13, %v3718_v33, %v1819_v53  ;;  %v2922_v44 = vpop.eup %2921  ;;  %v1774_v16 = vmul.f32 1.442695, %v3754_v42  ;;  %v1776_v13 = vmul.f32 1.442695, %v3765_v36  ;;  %vm1832_vm3 = vcmp.gt.f32.partialorder %v3754_v42, 20.0 }
 0x275   : > { %v1805_v22 = vadd.f32 2.0, %v1789_v32  ;;  %v1790_v43 = vmul.f32 %v2920_v20, %v1782_v27  ;;  %v2924_v49 = vpop.eup %2923  ;;  %v1820_v40 = vmul.f32 %v2922_v44, %v1796_v48  ;;  %v1797_v55 = vmul.f32 %v1789_v32, %v3729_v3 }
 0x276   : > { %v1783_v51 = vadd.f32 2.0, %v2924_v49  ;;  %v3786_v18 = vpop.f32.mrf.mxu0  ;;  %vm1833_vm4 = vcmp.gt.f32.partialorder %v3765_v36, 20.0 }
 0x277   : > { %2925 = vrcp.f32 %v1805_v22  ;;  %v1806_v33 = vadd.f32 2.0, %v1790_v43  ;;  %v1836_v35 = vsel %vm1828_vm14, %v3724_v39, %v1820_v40  ;;  %v1798_v5 = vmul.f32 %v1790_v43, %v3736_v47 }
 0x278   : > { %2927 = vpow2.f32 %v1774_v16  ;;  %v1791_v12 = vmul.f32 %v2924_v49, %v1783_v51 }
 0x279   : > { %2929 = vrcp.f32 %v1806_v33 }
 0x27a   : > { %2651 = vmatmul.msk.f32.gmra.mxu3 %vm446_vm0, %v1834_v28  ;;  %2931 = vpow2.f32 %v1776_v13  ;;  %v1807_v2 = vadd.f32 2.0, %v1791_v12 }
 0x27c   : > { %2933 = vrcp.f32 %v1807_v2 }
 0x27d   : > { %v2926_v54 = vpop.eup %2925 }
 0x27e   : > { %v2928_v34 = vpop.eup %2927  ;;  %v1821_v1 = vmul.f32 %v2926_v54, %v1797_v55  ;;  %v1981_v28 = vpop.f32.mrf.mxu0 }
 0x27f   : > { %v1784_v39 = vadd.f32 2.0, %v2928_v34  ;;  %v2930_v41 = vpop.eup %2929 }
 0x280   : > { %v1837_v17 = vsel %vm1829_vm15, %v3729_v3, %v1821_v1  ;;  %v2932_v46 = vpop.eup %2931  ;;  %v1822_v60 = vmul.f32 %v2930_v41, %v1798_v5  ;;  %v1799_v3 = vmul.f32 %v1791_v12, %v3742_v4 }
 0x281   : > { %v1792_v6 = vmul.f32 %v2928_v34, %v1784_v39  ;;  %v1785_v11 = vadd.f32 2.0, %v2932_v46 }
 0x282   : > { %2652 = vmatmul.msk.f32.gmra.mxu3 %vm446_vm0, %v1835_v52  ;;  %v1838_v58 = vsel %vm1830_vm1, %v3736_v47, %v1822_v60  ;;  %v2934_v59 = vpop.eup %2933 }
 0x283   : > { %v1808_v10 = vadd.f32 2.0, %v1792_v6  ;;  %v1793_v15 = vmul.f32 %v2932_v46, %v1785_v11  ;;  %v1823_v57 = vmul.f32 %v2934_v59, %v1799_v3  ;;  %v1800_v47 = vmul.f32 %v1792_v6, %v3754_v42 }
 0x285   : > { %v3763_v50 = vpop.f32.mrf.mxu3  ;;  %2935 = vrcp.f32 %v1808_v10  ;;  %v1809_v63 = vadd.f32 2.0, %v1793_v15  ;;  %v1839_v29 = vsel %vm1831_vm2, %v3742_v4, %v1823_v57  ;;  %v1801_v19 = vmul.f32 %v1793_v15, %v3765_v36  ;;  %v3799_v4 = vld [vmem:[%s4065_s6] ss:$0 sm:$0xff] }
 0x286   : > { %v1984_v22 = vpop.f32.mrf.mxu0  ;;  %v3827_v33 = vadd.f32 %v3799_v4, %v3763_v50  ;;  %v3843_v3 = vadd.f32 %v3799_v4, %v1981_v28 }
 0x287   : > { %2937 = vrcp.f32 %v1809_v63  ;;  %v3837_v6 = vadd.f32 %v3799_v4, %v1984_v22 }
 0x288   : > { %v2077_v1 = vmul.f32 1.442695, %v3827_v33  ;;  %vm2324_vm10 = vcmp.gt.f32.partialorder %v3827_v33, 20.0  ;;  %vm2321_vm13 = vcmp.gt.f32.partialorder %v3843_v3, 20.0 }
 0x289   : > { %v2073_v15 = vmul.f32 1.442695, %v3837_v6  ;;  %vm2322_vm12 = vcmp.gt.f32.partialorder %v3837_v6, 20.0 }
 0x28a   : > { %2653 = vmatmul.msk.f32.gmra.mxu3 %vm446_vm0, %v1836_v35 }
 0x28b   : > { %v2936_v21 = vpop.eup %2935 }
 0x28c   : > { %v1824_v25 = vmul.f32 %v2936_v21, %v1800_v47 }
 0x28d   : > { %v3774_v0 = vpop.f32.mrf.mxu3  ;;  %v2938_v8 = vpop.eup %2937 }
 0x28e   : > { %v1840_v24 = vsel %vm1832_vm3, %v3754_v42, %v1824_v25  ;;  %v1825_v31 = vmul.f32 %v2938_v8, %v1801_v19  ;;  %v3822_v43 = vadd.f32 %v3799_v4, %v3774_v0  ;;  %v1987_v35 = vpop.f32.mrf.mxu0  ;;  %v3848_v25 = vadd.f32 %v3799_v4, %v3786_v18 }
 0x28f   : > { %v3833_v0 = vadd.f32 %v3799_v4, %v1987_v35  ;;  %v3856_v18 = vadd.f32 %v3799_v4, %v3780_v56  ;;  %v3864_v56 = vadd.f32 %v3799_v4, %v3772_v61 }
 0x290   : > { %v1841_v37 = vsel %vm1833_vm4, %v3765_v36, %v1825_v31  ;;  %v2079_v54 = vmul.f32 1.442695, %v3822_v43  ;;  %vm2325_vm9 = vcmp.gt.f32.partialorder %v3822_v43, 20.0  ;;  %vm2320_vm14 = vcmp.gt.f32.partialorder %v3848_v25, 20.0 }
 0x291   : > { %v2075_v46 = vmul.f32 1.442695, %v3833_v0  ;;  %vm2323_vm11 = vcmp.gt.f32.partialorder %v3833_v0, 20.0  ;;  %vm2319_vm15 = vcmp.gt.f32.partialorder %v3856_v18, 20.0  ;;  %vm2318_vm1 = vcmp.gt.f32.partialorder %v3864_v56, 20.0 }
 0x292   : > { %2654 = vmatmul.msk.f32.gmra.mxu3 %vm446_vm0, %v1837_v17 }
 0x295   : > { %v1996_v7 = vpop.f32.mrf.mxu3 }
 0x296   : > { %v3817_v44 = vadd.f32 %v3799_v4, %v1996_v7 }
 0x298   : > { %v2081_v49 = vmul.f32 1.442695, %v3817_v44  ;;  %vm2326_vm8 = vcmp.gt.f32.partialorder %v3817_v44, 20.0 }
 0x29a   : > { %2655 = vmatmul.msk.f32.gmra.mxu3 %vm446_vm0, %v1838_v58 }
 0x29d   : > { %v1999_v26 = vpop.f32.mrf.mxu3 }
 0x29e   : > { %v3810_v53 = vadd.f32 %v3799_v4, %v1999_v26 }
 0x2a0   : > { %v2083_v27 = vmul.f32 1.442695, %v3810_v53  ;;  %vm2327_vm7 = vcmp.gt.f32.partialorder %v3810_v53, 20.0 }
 0x2a2   : > { %2656 = vmatmul.msk.f32.gmra.mxu3 %vm446_vm0, %v1839_v29 }
 0x2a5   : > { %v2002_v23 = vpop.f32.mrf.mxu3 }
 0x2a6   : > { %v3802_v9 = vadd.f32 %v3799_v4, %v2002_v23 }
 0x2a8   : > { %v2085_v42 = vmul.f32 1.442695, %v3802_v9  ;;  %vm2328_vm6 = vcmp.gt.f32.partialorder %v3802_v9, 20.0 }
 0x2aa   : > { %2657 = vmatmul.msk.f32.gmra.mxu3 %vm446_vm0, %v1840_v24  ;;  %v2071_v24 = vmul.f32 1.442695, %v3843_v3 }
 0x2ad   : > { %v2005_v30 = vpop.f32.mrf.mxu3 }
 0x2ae   : > { %v3805_v32 = vadd.f32 %v3799_v4, %v2005_v30 }
 0x2b0   : > { %v2087_v20 = vmul.f32 1.442695, %v3805_v32  ;;  %vm2329_vm5 = vcmp.gt.f32.partialorder %v3805_v32, 20.0 }
 0x2b2   : > { %2939 = vpow2.f32 %v2087_v20  ;;  %2658 = vmatmul.msk.f32.gmra.mxu3 %vm446_vm0, %v1841_v37 }
 0x2b3   : > { %2941 = vpow2.f32 %v2085_v42 }
 0x2b4   : > { %2943 = vpow2.f32 %v2083_v27 }
 0x2b5   : > { %v2008_v52 = vpop.f32.mrf.mxu3 }
 0x2b6   : > { %v2009_v16 = vadd.f32 %v3799_v4, %v2008_v52  ;;  %v2069_v52 = vmul.f32 1.442695, %v3848_v25 }
 0x2b8   : > { %v2940_v48 = vpop.eup %2939  ;;  %v2089_v38 = vmul.f32 1.442695, %v2009_v16  ;;  %vm2330_vm0 = vcmp.gt.f32.partialorder %v2009_v16, 20.0 }
 0x2b9   : > { %v2137_v40 = vadd.f32 2.0, %v2940_v48  ;;  %v2942_v36 = vpop.eup %2941 }
 0x2ba   : > { %2945 = vpow2.f32 %v2089_v38  ;;  %v2944_v55 = vpop.eup %2943  ;;  %v2136_v12 = vadd.f32 2.0, %v2942_v36 }
 0x2bb   : > { %2947 = vpow2.f32 %v2081_v49  ;;  %v2169_v13 = vmul.f32 %v2940_v48, %v2137_v40  ;;  %v2135_v41 = vadd.f32 2.0, %v2944_v55 }
 0x2bc   : > { %2949 = vpow2.f32 %v2079_v54  ;;  %v2168_v17 = vmul.f32 %v2942_v36, %v2136_v12 }
 0x2bd   : > { %v3829_v51 = vpop.f32.mrf.mxu3  ;;  %v2233_v39 = vadd.f32 2.0, %v2169_v13  ;;  %2951 = vpow2.f32 %v2077_v1  ;;  %v2167_v11 = vmul.f32 %v2944_v55, %v2135_v41  ;;  %v2201_v19 = vmul.f32 %v2169_v13, %v3805_v32 }
 0x2be   : > { %v2232_v10 = vadd.f32 2.0, %v2168_v17  ;;  %v2200_v48 = vmul.f32 %v2168_v17, %v3802_v9  ;;  %v2067_v13 = vmul.f32 1.442695, %v3856_v18  ;;  %v3874_v17 = vadd.f32 %v3799_v4, %v3758_v45 }
 0x2bf   : > { %2953 = vrcp.f32 %v2233_v39  ;;  %v2231_v57 = vadd.f32 2.0, %v2167_v11  ;;  %v2199_v12 = vmul.f32 %v2167_v11, %v3810_v53  ;;  %v2065_v41 = vmul.f32 1.442695, %v3864_v56 }
 0x2c0   : > { %v2946_v34 = vpop.eup %2945  ;;  %v3882_v45 = vadd.f32 %v3799_v4, %v3744_v14  ;;  %vm2317_vm2 = vcmp.gt.f32.partialorder %v3874_v17, 20.0 }
 0x2c1   : > { %v2138_v2 = vadd.f32 2.0, %v2946_v34  ;;  %v2948_v5 = vpop.eup %2947 }
 0x2c2   : > { %v2134_v58 = vadd.f32 2.0, %v2948_v5  ;;  %v2950_v59 = vpop.eup %2949  ;;  %vm2316_vm3 = vcmp.gt.f32.partialorder %v3882_v45, 20.0 }
 0x2c3   : > { %v2170_v50 = vmul.f32 %v2946_v34, %v2138_v2  ;;  %v2952_v26 = vpop.eup %2951  ;;  %v2133_v29 = vadd.f32 2.0, %v2950_v59 }
 0x2c4   : > { %v2166_v63 = vmul.f32 %v2948_v5, %v2134_v58  ;;  %v2132_v30 = vadd.f32 2.0, %v2952_v26 }
 0x2c5   : > { %v2234_v7 = vadd.f32 2.0, %v2170_v50  ;;  %v3840_v60 = vpop.f32.mrf.mxu3  ;;  %v2954_v21 = vpop.eup %2953  ;;  %v2202_v47 = vmul.f32 %v2170_v50, %v2009_v16  ;;  %v2165_v37 = vmul.f32 %v2950_v59, %v2133_v29 }
 0x2c6   : > { %v2230_v20 = vadd.f32 2.0, %v2166_v63  ;;  %v2297_v22 = vmul.f32 %v2954_v21, %v2201_v19  ;;  %v2164_v36 = vmul.f32 %v2952_v26, %v2132_v30  ;;  %v2198_v5 = vmul.f32 %v2166_v63, %v3817_v44 }
 0x2c7   : > { %2955 = vrcp.f32 %v2234_v7  ;;  %v2229_v40 = vadd.f32 2.0, %v2165_v37 }
 0x2c8   : > { %2957 = vpow2.f32 %v2075_v46  ;;  %v2196_v19 = vmul.f32 %v2164_v36, %v3827_v33 }
 0x2c9   : > { %2959 = vrcp.f32 %v2232_v10 }
 0x2ca   : > { %2961 = vpow2.f32 %v2073_v15  ;;  %v2063_v15 = vmul.f32 1.442695, %v3874_v17 }
 0x2cb   : > { %2963 = vrcp.f32 %v2231_v57  ;;  %v2197_v57 = vmul.f32 %v2165_v37, %v3822_v43 }
 0x2cc   : > { %2965 = vpow2.f32 %v2071_v24  ;;  %v3892_v24 = vadd.f32 %v3799_v4, %v3733_v62 }
 0x2cd   : > { %v2956_v23 = vpop.eup %2955  ;;  %v3851_v8 = vpop.f32.mrf.mxu3  ;;  %2967 = vrcp.f32 %v2230_v20 }
 0x2ce   : > { %v2298_v28 = vmul.f32 %v2956_v23, %v2202_v47  ;;  %v2958_v31 = vpop.eup %2957  ;;  %2969 = vpow2.f32 %v2069_v52  ;;  %v2059_v62 = vmul.f32 1.442695, %v3892_v24  ;;  %vm2315_vm4 = vcmp.gt.f32.partialorder %v3892_v24, 20.0 }
 0x2cf   : > { %v2960_v27 = vpop.eup %2959  ;;  %v2131_v38 = vadd.f32 2.0, %v2958_v31  ;;  %2971 = vrcp.f32 %v2229_v40 }
 0x2d0   : > { %v2362_v42 = vsel %vm2330_vm0, %v2009_v16, %v2298_v28  ;;  %v2962_v49 = vpop.eup %2961  ;;  %v2361_v16 = vsel %vm2329_vm5, %v3805_v32, %v2297_v22  ;;  %v2296_v35 = vmul.f32 %v2960_v27, %v2200_v48  ;;  %v2228_v32 = vadd.f32 2.0, %v2164_v36 }
 0x2d1   : > { %2382 = vmatpush.xpose.msrb.mxu1 %v2362_v42  ;;  %v2964_v54 = vpop.eup %2963  ;;  %v2130_v34 = vadd.f32 2.0, %v2962_v49  ;;  %v2163_v2 = vmul.f32 %v2958_v31, %v2131_v38  ;;  %2973 = vpow2.f32 %v2067_v13  ;;  %v2061_v28 = vmul.f32 1.442695, %v3882_v45 }
 0x2d2   : > { %v2966_v1 = vpop.eup %2965  ;;  %v2360_v39 = vsel %vm2328_vm6, %v3802_v9, %v2296_v35  ;;  %v2295_v50 = vmul.f32 %v2964_v54, %v2199_v12  ;;  %2975 = vrcp.f32 %v2228_v32 }
 0x2d3   : > { %v2968_v61 = vpop.eup %2967  ;;  %v2129_v46 = vadd.f32 2.0, %v2966_v1  ;;  %v2227_v10 = vadd.f32 2.0, %v2163_v2  ;;  %v2162_v11 = vmul.f32 %v2962_v49, %v2130_v34  ;;  %2977 = vpow2.f32 %v2065_v41 }
 0x2d4   : > { %v2970_v7 = vpop.eup %2969  ;;  %v2359_v9 = vsel %vm2327_vm7, %v3810_v53, %v2295_v50  ;;  %v2294_v58 = vmul.f32 %v2968_v61, %v2198_v5  ;;  %v2195_v52 = vmul.f32 %v2163_v2, %v3833_v0 }
 0x2d5   : > { %v3867_v55 = vpop.f32.mrf.mxu3  ;;  %2383 = vmatpush.xpose.msrb.mxu1 %v2361_v16  ;;  %v2972_v59 = vpop.eup %2971  ;;  %v2128_v63 = vadd.f32 2.0, %v2970_v7  ;;  %2979 = vrcp.f32 %v2227_v10  ;;  %v2226_v53 = vadd.f32 2.0, %v2162_v11  ;;  %v2161_v21 = vmul.f32 %v2966_v1, %v2129_v46 }
 0x2d6   : > { %v2358_v47 = vsel %vm2326_vm8, %v3817_v44, %v2294_v58  ;;  %v2293_v23 = vmul.f32 %v2972_v59, %v2197_v57  ;;  %2981 = vpow2.f32 %v2063_v15  ;;  %v2194_v35 = vmul.f32 %v2162_v11, %v3837_v6 }
 0x2d7   : > { %v2974_v29 = vpop.eup %2973  ;;  %2983 = vrcp.f32 %v2226_v53  ;;  %v2225_v20 = vadd.f32 2.0, %v2161_v21  ;;  %v2160_v37 = vmul.f32 %v2970_v7, %v2128_v63 }
 0x2d8   : > { %v2976_v14 = vpop.eup %2975  ;;  %v2127_v30 = vadd.f32 2.0, %v2974_v29  ;;  %v2357_v44 = vsel %vm2325_vm9, %v3822_v43, %v2293_v23  ;;  %2985 = vpow2.f32 %v2061_v28 }
 0x2d9   : > { %2384 = vmatpush.xpose.msrb.mxu1 %v2360_v39  ;;  %v2978_v31 = vpop.eup %2977  ;;  %v2292_v42 = vmul.f32 %v2976_v14, %v2196_v19  ;;  %2987 = vrcp.f32 %v2225_v20  ;;  %v2224_v49 = vadd.f32 2.0, %v2160_v37 }
 0x2da   : > { %v2126_v48 = vadd.f32 2.0, %v2978_v31  ;;  %v2159_v40 = vmul.f32 %v2974_v29, %v2127_v30  ;;  %2989 = vpow2.f32 %v2059_v62 }
 0x2db   : > { %v2980_v22 = vpop.eup %2979  ;;  %v2356_v36 = vsel %vm2324_vm10, %v3827_v33, %v2292_v42  ;;  %2991 = vrcp.f32 %v2224_v49  ;;  %v2193_v33 = vmul.f32 %v2161_v21, %v3843_v3 }
 0x2dc   : > { %v2982_v38 = vpop.eup %2981  ;;  %v2291_v43 = vmul.f32 %v2980_v22, %v2195_v52  ;;  %v2223_v12 = vadd.f32 2.0, %v2159_v40  ;;  %v2158_v34 = vmul.f32 %v2978_v31, %v2126_v48 }
 0x2dd   : > { %v3885_v26 = vpop.f32.mrf.mxu3  ;;  %2385 = vmatpush.xpose.msrb.mxu1 %v2359_v9  ;;  %v2984_v16 = vpop.eup %2983  ;;  %v2125_v54 = vadd.f32 2.0, %v2982_v38 }
 0x2de   : > { %v2986_v13 = vpop.eup %2985  ;;  %v2355_v1 = vsel %vm2323_vm11, %v3833_v0, %v2291_v43  ;;  %v2290_v32 = vmul.f32 %v2984_v16, %v2194_v35  ;;  %2993 = vrcp.f32 %v2223_v12  ;;  %v2222_v41 = vadd.f32 2.0, %v2158_v34 }
 0x2df   : > { %v2988_v2 = vpop.eup %2987  ;;  %v2124_v50 = vadd.f32 2.0, %v2986_v13  ;;  %v2157_v5 = vmul.f32 %v2982_v38, %v2125_v54  ;;  %v2192_v0 = vmul.f32 %v2160_v37, %v3848_v25  ;;  %v2190_v14 = vmul.f32 %v2158_v34, %v3864_v56 }
 0x2e0   : > { %v2990_v61 = vpop.eup %2989  ;;  %v2354_v46 = vsel %vm2322_vm12, %v3837_v6, %v2290_v32  ;;  %v2289_v7 = vmul.f32 %v2988_v2, %v2193_v33  ;;  %2995 = vrcp.f32 %v2222_v41  ;;  %v2191_v6 = vmul.f32 %v2159_v40, %v3856_v18 }
 0x2e1   : > { %2386 = vmatpush.xpose.msrb.mxu1 %v2358_v47  ;;  %v2992_v10 = vpop.eup %2991  ;;  %v2123_v11 = vadd.f32 2.0, %v2990_v61  ;;  %v2221_v9 = vadd.f32 2.0, %v2157_v5  ;;  %v2156_v58 = vmul.f32 %v2986_v13, %v2124_v50  ;;  %v2189_v20 = vmul.f32 %v2157_v5, %v3874_v17 }
 0x2e2   : > { %v2353_v59 = vsel %vm2321_vm13, %v3843_v3, %v2289_v7  ;;  %v2288_v15 = vmul.f32 %v2992_v10, %v2192_v0 }
 0x2e3   : > { %2997 = vrcp.f32 %v2221_v9  ;;  %v2220_v29 = vadd.f32 2.0, %v2156_v58  ;;  %v2155_v53 = vmul.f32 %v2990_v61, %v2123_v11  ;;  %v2188_v42 = vmul.f32 %v2156_v58, %v3882_v45 }
 0x2e4   : > { %v2994_v57 = vpop.eup %2993  ;;  %v2352_v21 = vsel %vm2320_vm14, %v3848_v25, %v2288_v15 }
 0x2e5   : > { %v3899_v27 = vpop.f32.mrf.mxu3  ;;  %2387 = vmatpush.xpose.msrb.mxu1 %v2357_v44  ;;  %v2287_v47 = vmul.f32 %v2994_v57, %v2191_v6  ;;  %2999 = vrcp.f32 %v2220_v29  ;;  %v2219_v3 = vadd.f32 2.0, %v2155_v53  ;;  %v2187_v48 = vmul.f32 %v2155_v53, %v3892_v24 }
 0x2e6   : > { %v2996_v23 = vpop.eup %2995 }
 0x2e7   : > { %v2351_v28 = vsel %vm2319_vm15, %v3856_v18, %v2287_v47  ;;  %v2286_v19 = vmul.f32 %v2996_v23, %v2190_v14  ;;  %3001 = vrcp.f32 %v2219_v3 }
 0x2e9   : > { %2388 = vmatpush.xpose.msrb.mxu1 %v2356_v36  ;;  %v2998_v30 = vpop.eup %2997  ;;  %v2350_v25 = vsel %vm2318_vm1, %v3864_v56, %v2286_v19 }
 0x2ea   : > { %v2285_v37 = vmul.f32 %v2998_v30, %v2189_v20 }
 0x2eb   : > { %v3000_v44 = vpop.eup %2999 }
 0x2ec   : > { %v2349_v18 = vsel %vm2317_vm2, %v3874_v17, %v2285_v37  ;;  %v2284_v22 = vmul.f32 %v3000_v44, %v2188_v42 }
 0x2ed   : > { %v3907_v39 = vpop.f32.mrf.mxu3  ;;  %2389 = vmatpush.xpose.msrb.mxu1 %v2355_v1  ;;  %v3002_v62 = vpop.eup %3001 }
 0x2ee   : > { %v2348_v38 = vsel %vm2316_vm3, %v3882_v45, %v2284_v22  ;;  %v2283_v56 = vmul.f32 %v3002_v62, %v2187_v48  ;;  %v3974_v62 = vadd.f32 %v3799_v4, %v3899_v27 }
 0x2f0   : > { %v2347_v49 = vsel %vm2315_vm4, %v3892_v24, %v2283_v56  ;;  %v2101_v27 = vmul.f32 1.442695, %v3974_v62  ;;  %vm2336_vm14 = vcmp.gt.f32.partialorder %v3974_v62, 20.0 }
 0x2f1   : > { %2390 = vmatpush.xpose.msrb.mxu1 %v2354_v46 }
 0x2f5   : > { %v3915_v63 = vpop.f32.mrf.mxu3  ;;  %2391 = vmatpush.xpose.msrb.mxu1 %v2353_v59 }
 0x2f6   : > { %v3964_v47 = vadd.f32 %v3799_v4, %v3915_v63 }
 0x2f8   : > { %v2105_v20 = vmul.f32 1.442695, %v3964_v47  ;;  %vm2338_vm12 = vcmp.gt.f32.partialorder %v3964_v47, 20.0 }
 0x2f9   : > { %2392 = vmatpush.xpose.msrb.mxu1 %v2352_v21 }
 0x2fd   : > { %v2035_v31 = vpop.f32.mrf.mxu3  ;;  %2393 = vmatpush.xpose.msrb.mxu1 %v2351_v28 }
 0x2fe   : > { %v3959_v58 = vadd.f32 %v3799_v4, %v2035_v31  ;;  %v3969_v31 = vadd.f32 %v3799_v4, %v3907_v39 }
 0x300   : > { %v2107_v23 = vmul.f32 1.442695, %v3959_v58  ;;  %vm2339_vm11 = vcmp.gt.f32.partialorder %v3959_v58, 20.0  ;;  %vm2337_vm13 = vcmp.gt.f32.partialorder %v3969_v31, 20.0 }
 0x301   : > { %2394 = vmatpush.xpose.msrb.mxu1 %v2350_v25 }
 0x305   : > { %v2038_v52 = vpop.f32.mrf.mxu3  ;;  %2395 = vmatpush.xpose.msrb.mxu1 %v2349_v18 }
 0x306   : > { %v3955_v46 = vadd.f32 %v3799_v4, %v2038_v52  ;;  %v2103_v52 = vmul.f32 1.442695, %v3969_v31 }
 0x308   : > { %v2109_v59 = vmul.f32 1.442695, %v3955_v46  ;;  %vm2340_vm10 = vcmp.gt.f32.partialorder %v3955_v46, 20.0 }
 0x309   : > { %2396 = vmatpush.xpose.msrb.mxu1 %v2348_v38 }
 0x30d   : > { %v2041_v40 = vpop.f32.mrf.mxu3  ;;  %2397 = vmatpush.xpose.msrb.mxu1 %v2347_v49 }
 0x30e   : > { %v3951_v50 = vadd.f32 %v3799_v4, %v2041_v40 }
 0x310   : > { %v2111_v7 = vmul.f32 1.442695, %v3951_v50  ;;  %vm2341_vm9 = vcmp.gt.f32.partialorder %v3951_v50, 20.0 }
 0x315   : > { %v2044_v36 = vpop.f32.mrf.mxu3 }
 0x316   : > { %v3947_v1 = vadd.f32 %v3799_v4, %v2044_v36 }
 0x318   : > { %v2113_v61 = vmul.f32 1.442695, %v3947_v1  ;;  %vm2342_vm8 = vcmp.gt.f32.partialorder %v3947_v1, 20.0 }
 0x31d   : > { %v2047_v17 = vpop.f32.mrf.mxu3 }
 0x31e   : > { %v3942_v13 = vadd.f32 %v3799_v4, %v2047_v17 }
 0x320   : > { %v2115_v24 = vmul.f32 1.442695, %v3942_v13  ;;  %vm2343_vm7 = vcmp.gt.f32.partialorder %v3942_v13, 20.0 }
 0x325   : > { %v2050_v43 = vpop.f32.mrf.mxu3 }
 0x326   : > { %v3935_v35 = vadd.f32 %v3799_v4, %v2050_v43 }
 0x328   : > { %v2117_v12 = vmul.f32 1.442695, %v3935_v35  ;;  %vm2344_vm6 = vcmp.gt.f32.partialorder %v3935_v35, 20.0 }
 0x32d   : > { %v2053_v16 = vpop.f32.mrf.mxu3 }
 0x32e   : > { %v3938_v54 = vadd.f32 %v3799_v4, %v2053_v16  ;;  %v3980_v16 = vadd.f32 %v3799_v4, %v3885_v26  ;;  %v3988_v26 = vadd.f32 %v3799_v4, %v3867_v55  ;;  %v3996_v55 = vadd.f32 %v3799_v4, %v3851_v8 }
 0x32f   : > { %v4004_v8 = vadd.f32 %v3799_v4, %v3840_v60  ;;  %v4012_v60 = vadd.f32 %v3799_v4, %v3829_v51 }
 0x330   : > { %v2119_v45 = vmul.f32 1.442695, %v3938_v54  ;;  %vm2345_vm5 = vcmp.gt.f32.partialorder %v3938_v54, 20.0  ;;  %vm2335_vm15 = vcmp.gt.f32.partialorder %v3980_v16, 20.0  ;;  %vm2334_vm1 = vcmp.gt.f32.partialorder %v3988_v26, 20.0 }
 0x331   : > { %vm2333_vm2 = vcmp.gt.f32.partialorder %v3996_v55, 20.0  ;;  %vm2332_vm3 = vcmp.gt.f32.partialorder %v4004_v8, 20.0  ;;  %vm2331_vm4 = vcmp.gt.f32.partialorder %v4012_v60, 20.0 }
 0x332   : > { %3003 = vpow2.f32 %v2119_v45 }
 0x333   : > { %3005 = vpow2.f32 %v2117_v12 }
 0x334   : > { %3007 = vpow2.f32 %v2115_v24 }
 0x335   : > { %v2056_v34 = vpop.f32.mrf.mxu3 }
 0x336   : > { %v2057_v32 = vadd.f32 %v3799_v4, %v2056_v34  ;;  %v2091_v4 = vmul.f32 1.442695, %v4012_v60 }
 0x338   : > { %v3004_v2 = vpop.eup %3003  ;;  %v2121_v33 = vmul.f32 1.442695, %v2057_v32  ;;  %vm2346_vm0 = vcmp.gt.f32.partialorder %v2057_v32, 20.0 }
 0x339   : > { %v2153_v41 = vadd.f32 2.0, %v3004_v2  ;;  %v3006_v5 = vpop.eup %3005 }
 0x33a   : > { %3009 = vpow2.f32 %v2121_v33  ;;  %v3008_v0 = vpop.eup %3007  ;;  %v2152_v11 = vadd.f32 2.0, %v3006_v5 }
 0x33b   : > { %3011 = vpow2.f32 %v2113_v61  ;;  %v2185_v10 = vmul.f32 %v3004_v2, %v2153_v41  ;;  %v2151_v53 = vadd.f32 2.0, %v3008_v0  ;;  %v2099_v41 = vmul.f32 1.442695, %v3980_v16 }
 0x33c   : > { %3013 = vpow2.f32 %v2111_v7  ;;  %v2184_v29 = vmul.f32 %v3006_v5, %v2152_v11 }
 0x33d   : > { %v2249_v57 = vadd.f32 2.0, %v2185_v10  ;;  %3015 = vpow2.f32 %v2109_v59  ;;  %v2183_v28 = vmul.f32 %v3008_v0, %v2151_v53  ;;  %v2217_v48 = vmul.f32 %v2185_v10, %v3938_v54 }
 0x33e   : > { %v2248_v3 = vadd.f32 2.0, %v2184_v29  ;;  %v2216_v45 = vmul.f32 %v2184_v29, %v3935_v35 }
 0x33f   : > { %3017 = vrcp.f32 %v2249_v57  ;;  %v2247_v63 = vadd.f32 2.0, %v2183_v28  ;;  %v2215_v5 = vmul.f32 %v2183_v28, %v3942_v13 }
 0x340   : > { %v3010_v9 = vpop.eup %3009 }
 0x341   : > { %v2154_v15 = vadd.f32 2.0, %v3010_v9  ;;  %v3012_v21 = vpop.eup %3011 }
 0x342   : > { %v2150_v19 = vadd.f32 2.0, %v3012_v21  ;;  %v3014_v30 = vpop.eup %3013 }
 0x343   : > { %v2186_v6 = vmul.f32 %v3010_v9, %v2154_v15  ;;  %v3016_v25 = vpop.eup %3015  ;;  %v2149_v44 = vadd.f32 2.0, %v3014_v30  ;;  %v2097_v15 = vmul.f32 1.442695, %v3988_v26 }
 0x344   : > { %v2182_v37 = vmul.f32 %v3012_v21, %v2150_v19  ;;  %v2148_v38 = vadd.f32 2.0, %v3016_v25 }
 0x345   : > { %v2250_v14 = vadd.f32 2.0, %v2186_v6  ;;  %v3018_v42 = vpop.eup %3017  ;;  %v2218_v18 = vmul.f32 %v2186_v6, %v2057_v32  ;;  %v2181_v40 = vmul.f32 %v3014_v30, %v2149_v44  ;;  %v2093_v44 = vmul.f32 1.442695, %v4004_v8 }
 0x346   : > { %v2246_v49 = vadd.f32 2.0, %v2182_v37  ;;  %v2313_v17 = vmul.f32 %v3018_v42, %v2217_v48  ;;  %v2180_v2 = vmul.f32 %v3016_v25, %v2148_v38  ;;  %v2214_v57 = vmul.f32 %v2182_v37, %v3947_v1 }
 0x347   : > { %3019 = vrcp.f32 %v2250_v14  ;;  %v2245_v34 = vadd.f32 2.0, %v2181_v40  ;;  %v2213_v28 = vmul.f32 %v2181_v40, %v3951_v50 }
 0x348   : > { %3021 = vpow2.f32 %v2107_v23  ;;  %v2244_v0 = vadd.f32 2.0, %v2180_v2  ;;  %v2212_v42 = vmul.f32 %v2180_v2, %v3955_v46 }
 0x349   : > { %3023 = vrcp.f32 %v2248_v3  ;;  %v2095_v3 = vmul.f32 1.442695, %v3996_v55 }
 0x34a   : > { %3025 = vpow2.f32 %v2105_v20 }
 0x34b   : > { %3027 = vrcp.f32 %v2247_v63 }
 0x34c   : > { %3029 = vpow2.f32 %v2103_v52 }
 0x34d   : > { %v3020_v22 = vpop.eup %3019  ;;  %3031 = vrcp.f32 %v2246_v49 }
 0x34e   : > { %v2314_v39 = vmul.f32 %v3020_v22, %v2218_v18  ;;  %v3022_v56 = vpop.eup %3021  ;;  %3033 = vpow2.f32 %v2101_v27 }
 0x34f   : > { %v3024_v43 = vpop.eup %3023  ;;  %v2147_v12 = vadd.f32 2.0, %v3022_v56  ;;  %3035 = vrcp.f32 %v2245_v34 }
 0x350   : > { %v2378_v36 = vsel %vm2346_vm0, %v2057_v32, %v2314_v39  ;;  %v3026_v24 = vpop.eup %3025  ;;  %v2377_v32 = vsel %vm2345_vm5, %v3938_v54, %v2313_v17  ;;  %v2312_v33 = vmul.f32 %v3024_v43, %v2216_v45  ;;  %3037 = vpow2.f32 %v2099_v41 }
 0x351   : > { %2402 = vmatpush.xpose.msrb.mxu2 %v2378_v36  ;;  %v3028_v61 = vpop.eup %3027  ;;  %v2146_v7 = vadd.f32 2.0, %v3026_v24  ;;  %v2179_v11 = vmul.f32 %v3022_v56, %v2147_v12  ;;  %3039 = vrcp.f32 %v2244_v0  ;;  %vm2425_vm0 = vcmask 1040384  }
 0x352   : > { %v3030_v10 = vpop.eup %3029  ;;  %v2376_v54 = vsel %vm2344_vm6, %v3935_v35, %v2312_v33  ;;  %v2311_v9 = vmul.f32 %v3028_v61, %v2215_v5  ;;  %3041 = vpow2.f32 %v2097_v15 }
 0x353   : > { %v3032_v59 = vpop.eup %3031  ;;  %v2145_v6 = vadd.f32 2.0, %v3030_v10  ;;  %v2243_v53 = vadd.f32 2.0, %v2179_v11  ;;  %v2178_v21 = vmul.f32 %v3026_v24, %v2146_v7  ;;  %v2211_v51 = vmul.f32 %v2179_v11, %v3959_v58 }
 0x354   : > { %v3034_v29 = vpop.eup %3033  ;;  %v2375_v35 = vsel %vm2343_vm7, %v3942_v13, %v2311_v9  ;;  %v2310_v23 = vmul.f32 %v3032_v59, %v2214_v57 }
 0x355   : > { %2403 = vmatpush.xpose.msrb.mxu2 %v2377_v32  ;;  %v3036_v14 = vpop.eup %3035  ;;  %v2144_v19 = vadd.f32 2.0, %v3034_v29  ;;  %3043 = vrcp.f32 %v2243_v53  ;;  %v2242_v20 = vadd.f32 2.0, %v2178_v21  ;;  %v2177_v25 = vmul.f32 %v3030_v10, %v2145_v6 }
 0x356   : > { %v3038_v30 = vpop.eup %3037  ;;  %v2374_v13 = vsel %vm2342_vm8, %v3947_v1, %v2310_v23  ;;  %v2309_v63 = vmul.f32 %v3036_v14, %v2213_v28  ;;  %3045 = vpow2.f32 %v2095_v3 }
 0x357   : > { %v3040_v37 = vpop.eup %3039  ;;  %v2143_v18 = vadd.f32 2.0, %v3038_v30  ;;  %3047 = vrcp.f32 %v2242_v20  ;;  %v2241_v52 = vadd.f32 2.0, %v2177_v25  ;;  %v2176_v39 = vmul.f32 %v3034_v29, %v2144_v19 }
 0x358   : > { %v3042_v22 = vpop.eup %3041  ;;  %v2373_v1 = vsel %vm2341_vm9, %v3951_v50, %v2309_v63  ;;  %v2308_v48 = vmul.f32 %v3040_v37, %v2212_v42  ;;  %3049 = vpow2.f32 %v2093_v44  ;;  %v2210_v50 = vmul.f32 %v2178_v21, %v3964_v47 }
 0x359   : > { %2404 = vmatpush.xpose.msrb.mxu2 %v2376_v54  ;;  %v2142_v56 = vadd.f32 2.0, %v3042_v22  ;;  %3051 = vrcp.f32 %v2241_v52  ;;  %v2240_v40 = vadd.f32 2.0, %v2176_v39  ;;  %v2175_v36 = vmul.f32 %v3038_v30, %v2143_v18 }
 0x35a   : > { %v2372_v17 = vsel %vm2340_vm10, %v3955_v46, %v2308_v48  ;;  %3053 = vpow2.f32 %v2091_v4  ;;  %v2379_v46 = vld [vmem:[%s4066_s7] sm:$0x1]  ;;  %v2209_v61 = vmul.f32 %v2177_v25, %v3969_v31  ;;  %v2208_v54 = vmul.f32 %v2176_v39, %v3974_v62 }
 0x35b   : > { %v3044_v38 = vpop.eup %3043  ;;  %3055 = vrcp.f32 %v2240_v40  ;;  %v2239_v24 = vadd.f32 2.0, %v2175_v36  ;;  %v2174_v34 = vmul.f32 %v3042_v22, %v2142_v56  ;;  %2398 = vmatmul.f32.vlgmr.msrb.gmra.mxu1 %v2379_v46  ;;  %v2207_v53 = vmul.f32 %v2175_v36, %v3980_v16 }
 0x35c   : > { %v3046_v49 = vpop.eup %3045  ;;  %v2307_v43 = vmul.f32 %v3044_v38, %v2211_v51  ;;  %v2428_v39 = vlaneseq }
 0x35d   : > { %2405 = vmatpush.xpose.msrb.mxu2 %v2375_v35  ;;  %v3048_v27 = vpop.eup %3047  ;;  %v2141_v45 = vadd.f32 2.0, %v3046_v49  ;;  %3057 = vrcp.f32 %v2239_v24  ;;  %v2238_v7 = vadd.f32 2.0, %v2174_v34  ;;  %v2206_v3 = vmul.f32 %v2174_v34, %v3988_v26 }
 0x35e   : > { %v3050_v12 = vpop.eup %3049  ;;  %v2371_v2 = vsel %vm2339_vm11, %v3959_v58, %v2307_v43  ;;  %v2306_v32 = vmul.f32 %v3048_v27, %v2210_v50  ;;  %vm2430_vm5 = vcmp.lt.s32.totalorder %v2428_v39, 256 }
 0x35f   : > { %v3052_v33 = vpop.eup %3051  ;;  %v2140_v41 = vadd.f32 2.0, %v3050_v12  ;;  %v2173_v10 = vmul.f32 %v3046_v49, %v2141_v45  ;;  %3059 = vrcp.f32 %v2238_v7 }
 0x360   : > { %v3054_v5 = vpop.eup %3053  ;;  %v2370_v0 = vsel %vm2338_vm12, %v3964_v47, %v2306_v32  ;;  %v2305_v58 = vmul.f32 %v3052_v33, %v2209_v61 }
 0x361   : > { %2406 = vmatpush.xpose.msrb.mxu2 %v2374_v13  ;;  %v3056_v11 = vpop.eup %3055  ;;  %v2139_v9 = vadd.f32 2.0, %v3054_v5  ;;  %v2237_v59 = vadd.f32 2.0, %v2173_v10  ;;  %v2172_v15 = vmul.f32 %v3050_v12, %v2140_v41  ;;  %v2205_v20 = vmul.f32 %v2173_v10, %v3996_v55 }
 0x362   : > { %v2369_v57 = vsel %vm2337_vm13, %v3969_v31, %v2305_v58  ;;  %v2304_v6 = vmul.f32 %v3056_v11, %v2208_v54 }
 0x363   : > { %v3058_v29 = vpop.eup %3057  ;;  %3061 = vrcp.f32 %v2237_v59  ;;  %v2236_v47 = vadd.f32 2.0, %v2172_v15  ;;  %v2171_v21 = vmul.f32 %v3054_v5, %v2139_v9  ;;  %v2204_v63 = vmul.f32 %v2172_v15, %v4004_v8 }
 0x364   : > { %v2368_v35 = vsel %vm2336_vm14, %v3974_v62, %v2304_v6  ;;  %v2303_v23 = vmul.f32 %v3058_v29, %v2207_v53 }
 0x365   : > { %2407 = vmatpush.xpose.msrb.mxu2 %v2373_v1  ;;  %v3060_v14 = vpop.eup %3059  ;;  %3063 = vrcp.f32 %v2236_v47  ;;  %v2235_v31 = vadd.f32 2.0, %v2171_v21  ;;  %v2203_v42 = vmul.f32 %v2171_v21, %v4012_v60 }
 0x366   : > { %v2367_v28 = vsel %vm2335_vm15, %v3980_v16, %v2303_v23  ;;  %v2302_v19 = vmul.f32 %v3060_v14, %v2206_v3 }
 0x367   : > { %3065 = vrcp.f32 %v2235_v31 }
 0x368   : > { %v2366_v62 = vsel %vm2334_vm1, %v3988_v26, %v2302_v19 }
 0x369   : > { %2408 = vmatpush.xpose.msrb.mxu2 %v2372_v17  ;;  %v3062_v30 = vpop.eup %3061 }
 0x36a   : > { %v2301_v25 = vmul.f32 %v3062_v30, %v2205_v20 }
 0x36b   : > { %v3064_v13 = vpop.eup %3063 }
 0x36c   : > { %v2365_v16 = vsel %vm2333_vm2, %v3996_v55, %v2301_v25  ;;  %v2300_v37 = vmul.f32 %v3064_v13, %v2204_v63  ;;  %v2381_v55 = vstv %s2380_s16 }
 0x36d   : > { %2409 = vmatpush.xpose.msrb.mxu2 %v2371_v2  ;;  %v3066_v44 = vpop.eup %3065 }
 0x36e   : > { %v2364_v26 = vsel %vm2332_vm3, %v4004_v8, %v2300_v37  ;;  %v2299_v18 = vmul.f32 %v3066_v44, %v2203_v42 }
 0x370   : > { %v2363_v22 = vsel %vm2331_vm4, %v4012_v60, %v2299_v18 }
 0x371   : > { %2410 = vmatpush.xpose.msrb.mxu2 %v2370_v0 }
 0x375   : > { %2411 = vmatpush.xpose.msrb.mxu2 %v2369_v57 }
 0x379   : > { %2412 = vmatpush.xpose.msrb.mxu2 %v2368_v35 }
 0x37d   : > { %2413 = vmatpush.xpose.msrb.mxu2 %v2367_v28 }
 0x381   : > { %2414 = vmatpush.xpose.msrb.mxu2 %v2366_v62 }
 0x385   : > { %2415 = vmatpush.xpose.msrb.mxu2 %v2365_v16 }
 0x389   : > { %2416 = vmatpush.xpose.msrb.mxu2 %v2364_v26 }
 0x38d   : > { %2417 = vmatpush.xpose.msrb.mxu2 %v2363_v22 }
 0x390   : > { %2418 = vmatmul.f32.vlgmr.msrb.gmra.mxu2 %v2379_v46 }
 0x3d8   : > { %v2399_v52 = vpop.f32.mrf.mxu1 }
 0x3d9   : > { %v2400_v38 = vadd.f32 %v2399_v52, %v2381_v55 }
 0x413   : > { %v2419_v1 = vpop.f32.mrf.mxu2 }
 0x414   : > { %v2420_v48 = vadd.f32 %v2419_v1, %v2381_v55 }
 0x416   : > { %v2424_v8 = vrot.slane %v2420_v48, 7 }
 0x418   : > { %v2426_v60 = vsel %vm2425_vm0, %v2400_v38, %v2424_v8 }
 0x419   : > { %2432 = vst.msk [vmem:[%s361_s19] sm:$0x3] %vm2430_vm5, %v2426_v60 }
 0x41a PF: > { %s20_s11 = sadd.s32 1, %s3074_s11  }
 0x41b   : > { %p17_p5 = scmp.ge.s32.totalorder %s20_s11, 4  }
 0x41d   :  { %19 = sbr.rel (!%p17_p5) target bundleno = 2 (0x2), region = 100 }

</bundles_post_ra>
